<compile_context>
chip_gen: v7x
topology: tpu7x:2x2x1
jax: 0.10.0
libtpu: 0.0.40
codegen_flags: <defaults>
</compile_context>

<pallas_src>
import functools

import jax
import jax.numpy as jnp
from jax.experimental import pallas as pl
from jax.experimental.pallas import tpu as pltpu


def _round_up(x, m):
    return (x + m - 1) // m * m


def _pack_gates(w_t, H, Hp):
    """(rows, 3H) with columns [r|z|n] -> (rows, 3*Hp); gate g in lanes [g*Hp, g*Hp+H)."""
    rows = w_t.shape[0]
    out = jnp.zeros((rows, 3 * Hp), jnp.float32)
    for g in range(3):
        out = out.at[:, g * Hp:g * Hp + H].set(
            w_t[:, g * H:(g + 1) * H].astype(jnp.float32))
    return out


def _gru_fused_kernel(x_ref, wih_ref, whh_ref, gib_ref, bhn_ref, out_ref, h_ref,
                      *, H, Hp, chunk, B_pad):
    """One grid step == `chunk` GRU timesteps.

    x_ref  : (chunk*B_pad, F)  time-major input rows (t, b) for this chunk
    wih_ref: (F, 3*Hp)         W_ih^T, gate-padded to 128 lanes (resident)
    whh_ref: (Hp, 3*Hp)        W_hh^T, gate/contraction padded (resident)
    gib_ref: (1, 3*Hp)         b_ih + [b_hr, b_hz, 0], gate-padded
    bhn_ref: (1, Hp)           b_hn (applied inside the r*(...) term)
    out_ref: (chunk, B_pad, H) time-major output block
    h_ref  : (B_pad, Hp) f32   recurrent hidden state, persists across grid steps
    """
    c = pl.program_id(0)

    @pl.when(c == 0)
    def _():
        h_ref[...] = jnp.zeros_like(h_ref)  # PyTorch default h0 = zeros

    # Input projection for the whole chunk: one MXU matmul, off the per-step path.
    gi = (jnp.dot(x_ref[...], wih_ref[...], preferred_element_type=jnp.float32)
          + gib_ref[...])                                    # (chunk*B_pad, 3*Hp)

    whh = whh_ref[...]                                       # (Hp, 3*Hp)
    bhn = jnp.broadcast_to(bhn_ref[...], (B_pad, Hp))        # hoisted out of the loop
    h = h_ref[...]                                           # (B_pad, Hp) f32

    for k in range(chunk):                                   # static, fully unrolled
        # Whole 8-sublane tile group for timestep k (time-major rows).
        gi_k = gi[k * B_pad:(k + 1) * B_pad, :]              # (B_pad, 3*Hp)
        gh = jnp.dot(h, whh, preferred_element_type=jnp.float32)  # (B_pad, 3*Hp)
        # 128-lane-aligned gate extraction (no lane rotates / masked selects).
        r = jax.nn.sigmoid(gi_k[:, 0:Hp] + gh[:, 0:Hp])
        z = jax.nn.sigmoid(gi_k[:, Hp:2 * Hp] + gh[:, Hp:2 * Hp])
        n = jnp.tanh(gi_k[:, 2 * Hp:3 * Hp] + r * (gh[:, 2 * Hp:3 * Hp] + bhn))
        h = (1.0 - z) * n + z * h
        # Per-step, whole-tile, time-major store (no list/concat epilogue).
        out_ref[k] = h[:, :H].astype(out_ref.dtype)

    h_ref[...] = h


def gru_forward(x_btf, w_ih, w_hh, b_ih, b_hh, *, chunk=None):
    """x_btf: (B, T, F); w_ih: (3H, F); w_hh: (3H, H); b_ih/b_hh: (3H,).

    Returns rnn_out with shape (B, T, H), matching EncoderV0.forward(X).
    """
    B, T, F = x_btf.shape
    H3, H = w_hh.shape
    assert H3 == 3 * H

    Hp = _round_up(max(H, 128), 128)          # gate sections padded to 128-lane groups
    B_pad = _round_up(max(B, 8), 8)           # batch padded to full sublane groups

    if chunk is None:
        chunk = T if T <= 32 else 32          # chunk < T at realistic T -> DMA/compute overlap
        while T % chunk:
            chunk -= 1
    assert T % chunk == 0
    n_chunks = T // chunk

    f32 = jnp.float32
    # --- weights / biases packed with each gate padded to its own 128-lane group ---
    wih_p = _pack_gates(jnp.transpose(w_ih).astype(f32), H, Hp)             # (F, 3Hp)
    whh_p = jnp.zeros((Hp, 3 * Hp), f32).at[:H, :].set(
        _pack_gates(jnp.transpose(w_hh).astype(f32), H, Hp))                # (Hp, 3Hp)
    # Fold b_ih plus the r/z slices of b_hh into the input projection; b_hn stays
    # separate (it lives inside the r * (h W_hn^T + b_hn) term).
    b_fold = (b_ih + jnp.concatenate([b_hh[:2 * H], jnp.zeros((H,), b_hh.dtype)])
              ).astype(f32).reshape(1, 3 * H)
    gib_p = _pack_gates(b_fold, H, Hp)                                      # (1, 3Hp)
    bhn_p = jnp.zeros((1, Hp), f32).at[0, :H].set(b_hh[2 * H:].astype(f32))  # (1, Hp)

    # --- time-major, batch-padded input: rows ordered (t, b) ---
    x_tbf = jnp.transpose(x_btf.astype(f32), (1, 0, 2))                     # (T, B, F)
    x_tbf = jnp.pad(x_tbf, ((0, 0), (0, B_pad - B), (0, 0)))                # (T, B_pad, F)
    x2d = x_tbf.reshape(T * B_pad, F)

    kernel = functools.partial(_gru_fused_kernel, H=H, Hp=Hp, chunk=chunk,
                               B_pad=B_pad)
    out_tbh = pl.pallas_call(
        kernel,
        out_shape=jax.ShapeDtypeStruct((T, B_pad, H), x_btf.dtype),
        grid_spec=pltpu.PrefetchScalarGridSpec(
            num_scalar_prefetch=0,
            grid=(n_chunks,),
            in_specs=[
                pl.BlockSpec((chunk * B_pad, F), lambda c: (c, 0)),   # x chunk (pipelined)
                pl.BlockSpec((F, 3 * Hp), lambda c: (0, 0)),          # W_ih^T (resident)
                pl.BlockSpec((Hp, 3 * Hp), lambda c: (0, 0)),         # W_hh^T (resident)
                pl.BlockSpec((1, 3 * Hp), lambda c: (0, 0)),          # folded bias (resident)
                pl.BlockSpec((1, Hp), lambda c: (0, 0)),              # b_hn (resident)
            ],
            out_specs=pl.BlockSpec((chunk, B_pad, H), lambda c: (c, 0, 0)),
            scratch_shapes=[pltpu.VMEM((B_pad, Hp), jnp.float32)],    # hidden state carry
        ),
        compiler_params=pltpu.CompilerParams(
            # Time-chunk axis is a true recurrence: must stay sequential.
            dimension_semantics=("arbitrary",),
        ),
    )(x2d, wih_p, whh_p, gib_p, bhn_p)

    # (T, B_pad, H) -> (B, T, H); drop batch padding.
    return jnp.transpose(out_tbh, (1, 0, 2))[:B]


def _gru_reference(x_btf, w_ih, w_hh, b_ih, b_hh):
    """Pure-JAX reference matching torch.nn.GRU semantics (gate order r, z, n)."""
    B, T, F = x_btf.shape
    H = w_hh.shape[1]
    h = jnp.zeros((B, H), jnp.float32)
    outs = []
    for t in range(T):
        x = x_btf[:, t, :].astype(jnp.float32)
        gi = x @ w_ih.T + b_ih
        gh = h @ w_hh.T + b_hh
        i_r, i_z, i_n = gi[:, :H], gi[:, H:2 * H], gi[:, 2 * H:]
        h_r, h_z, h_n = gh[:, :H], gh[:, H:2 * H], gh[:, 2 * H:]
        r = jax.nn.sigmoid(i_r + h_r)
        z = jax.nn.sigmoid(i_z + h_z)
        n = jnp.tanh(i_n + r * h_n)
        h = (1.0 - z) * n + z * h
        outs.append(h)
    return jnp.stack(outs, axis=1).astype(x_btf.dtype)


if __name__ == "__main__":
    # Small shapes implied by the module: X is (batch, seq, n_features).
    B, T, F, H = 2, 8, 4, 32

    key = jax.random.PRNGKey(0)
    kx, k1, k2, k3, k4 = jax.random.split(key, 5)

    x = jax.random.normal(kx, (B, T, F), dtype=jnp.float32)

    # Deterministic parameter init mirroring nn.GRU: uniform(-1/sqrt(H), 1/sqrt(H)).
    bound = 1.0 / jnp.sqrt(jnp.float32(H))
    w_ih = jax.random.uniform(k1, (3 * H, F), jnp.float32, -bound, bound)
    w_hh = jax.random.uniform(k2, (3 * H, H), jnp.float32, -bound, bound)
    b_ih = jax.random.uniform(k3, (3 * H,), jnp.float32, -bound, bound)
    b_hh = jax.random.uniform(k4, (3 * H,), jnp.float32, -bound, bound)

    ref = _gru_reference(x, w_ih, w_hh, b_ih, b_hh)

    # Default (single chunk == whole sequence at this toy length).
    rnn_out = gru_forward(x, w_ih, w_hh, b_ih, b_hh)
    jax.block_until_ready(rnn_out)
    assert rnn_out.shape == (B, T, H)
    assert jnp.allclose(rnn_out, ref, atol=1e-5, rtol=1e-5)

    # Multi-chunk path (chunk < T): exercises the carried hidden state and the
    # pipelined time-chunk grid / BlockSpecs.
    rnn_out_chunked = gru_forward(x, w_ih, w_hh, b_ih, b_hh, chunk=4)
    jax.block_until_ready(rnn_out_chunked)
    assert jnp.allclose(rnn_out_chunked, ref, atol=1e-5, rtol=1e-5)

    print("KERNEL_OK")
</pallas_src>

<mosaic_0001>
module attributes {stable_mosaic.version = 11 : i64} {
  func.func @_gru_fused_kernel(%arg0: i32, %arg1: memref<64x4xf32, #tpu.memory_space<vmem>>, %arg2: memref<4x384xf32, #tpu.memory_space<vmem>>, %arg3: memref<128x384xf32, #tpu.memory_space<vmem>>, %arg4: memref<1x384xf32, #tpu.memory_space<vmem>>, %arg5: memref<1x128xf32, #tpu.memory_space<vmem>>, %arg6: memref<8x8x32xf32, #tpu.memory_space<vmem>>, %arg7: memref<8x128xf32, #tpu.memory_space<vmem>>) attributes {dimension_semantics = [#tpu.dimension_semantics<arbitrary>], iteration_bounds = array<i64: 1>, scalar_prefetch = 0 : i64, scratch_operands = 1 : i64, tpu.core_type = #tpu.core_type<tc>, window_params = [{transform_indices = @transform_0, window_bounds = array<i64: 64, 4>}, {pipeline_mode = #tpu.pipeline_mode<synchronous>, transform_indices = @transform_1, window_bounds = array<i64: 4, 384>}, {pipeline_mode = #tpu.pipeline_mode<synchronous>, transform_indices = @transform_2, window_bounds = array<i64: 128, 384>}, {pipeline_mode = #tpu.pipeline_mode<synchronous>, transform_indices = @transform_3, window_bounds = array<i64: 1, 384>}, {pipeline_mode = #tpu.pipeline_mode<synchronous>, transform_indices = @transform_4, window_bounds = array<i64: 1, 128>}, {transform_indices = @transform_5, window_bounds = array<i64: 8, 8, 32>}]} {
    %c0_i32 = arith.constant 0 : i32
    %0 = arith.cmpi eq, %arg0, %c0_i32 : i32
    %1 = arith.extui %0 : i1 to i32
    %c0_i32_0 = arith.constant 0 : i32
    %2 = arith.cmpi ne, %1, %c0_i32_0 : i32
    scf.if %2 {
      %cst_63 = arith.constant 0.000000e+00 : f32
      %279 = vector.broadcast %cst_63 : f32 to vector<8x128xf32>
      %c0_64 = arith.constant 0 : index
      %c0_65 = arith.constant 0 : index
      %280 = vector.load %arg7[%c0_64, %c0_65] : memref<8x128xf32, #tpu.memory_space<vmem>>, vector<8x128xf32>
      tpu.vector_store %arg7[%c0_64, %c0_65], %279 {strides = array<i32>} : memref<8x128xf32, #tpu.memory_space<vmem>>, vector<8x128xf32>,
    } else {
    }
    %c0 = arith.constant 0 : index
    %c0_1 = arith.constant 0 : index
    %3 = vector.load %arg1[%c0, %c0_1] : memref<64x4xf32, #tpu.memory_space<vmem>>, vector<64x4xf32>
    %c0_2 = arith.constant 0 : index
    %c0_3 = arith.constant 0 : index
    %4 = vector.load %arg2[%c0_2, %c0_3] : memref<4x384xf32, #tpu.memory_space<vmem>>, vector<4x384xf32>
    %cst = arith.constant dense<0.000000e+00> : vector<64x384xf32>
    %5 = tpu.matmul %3, %4, %cst {dimension_numbers = #tpu.dot_dimension_numbers<[1], [0], [0], [1], [0, 0, 1, 1], [], []>} : vector<64x4xf32>, vector<4x384xf32>, vector<64x384xf32> -> vector<64x384xf32>
    %c0_4 = arith.constant 0 : index
    %c0_5 = arith.constant 0 : index
    %6 = vector.load %arg4[%c0_4, %c0_5] : memref<1x384xf32, #tpu.memory_space<vmem>>, vector<1x384xf32>
    %7 = vector.broadcast %6 : vector<1x384xf32> to vector<64x384xf32>
    %8 = arith.addf %5, %7 : vector<64x384xf32>
    %c0_6 = arith.constant 0 : index
    %c0_7 = arith.constant 0 : index
    %9 = vector.load %arg3[%c0_6, %c0_7] : memref<128x384xf32, #tpu.memory_space<vmem>>, vector<128x384xf32>
    %c0_8 = arith.constant 0 : index
    %c0_9 = arith.constant 0 : index
    %10 = vector.load %arg5[%c0_8, %c0_9] : memref<1x128xf32, #tpu.memory_space<vmem>>, vector<1x128xf32>
    %11 = vector.shape_cast %10 : vector<1x128xf32> to vector<1x128xf32>
    %12 = vector.broadcast %11 : vector<1x128xf32> to vector<8x128xf32>
    %c0_10 = arith.constant 0 : index
    %c0_11 = arith.constant 0 : index
    %13 = vector.load %arg7[%c0_10, %c0_11] : memref<8x128xf32, #tpu.memory_space<vmem>>, vector<8x128xf32>
    %14 = vector.extract_strided_slice %8 {offsets = [0, 0], sizes = [8, 384], strides = [1, 1]} : vector<64x384xf32> to vector<8x384xf32>
    %cst_12 = arith.constant dense<0.000000e+00> : vector<8x384xf32>
    %15 = tpu.matmul %13, %9, %cst_12 {dimension_numbers = #tpu.dot_dimension_numbers<[1], [0], [0], [1], [0, 0, 1, 1], [], []>} : vector<8x128xf32>, vector<128x384xf32>, vector<8x384xf32> -> vector<8x384xf32>
    %16 = vector.extract_strided_slice %14 {offsets = [0, 0], sizes = [8, 128], strides = [1, 1]} : vector<8x384xf32> to vector<8x128xf32>
    %17 = vector.extract_strided_slice %15 {offsets = [0, 0], sizes = [8, 128], strides = [1, 1]} : vector<8x384xf32> to vector<8x128xf32>
    %18 = arith.addf %16, %17 : vector<8x128xf32>
    %19 = arith.negf %18 : vector<8x128xf32>
    %20 = math.exp %19 : vector<8x128xf32>
    %cst_13 = arith.constant 1.000000e+00 : f32
    %21 = vector.broadcast %cst_13 : f32 to vector<8x128xf32>
    %22 = arith.addf %21, %20 : vector<8x128xf32>
    %23 = arith.divf %21, %22 : vector<8x128xf32>
    %24 = vector.extract_strided_slice %14 {offsets = [0, 128], sizes = [8, 128], strides = [1, 1]} : vector<8x384xf32> to vector<8x128xf32>
    %25 = vector.extract_strided_slice %15 {offsets = [0, 128], sizes = [8, 128], strides = [1, 1]} : vector<8x384xf32> to vector<8x128xf32>
    %26 = arith.addf %24, %25 : vector<8x128xf32>
    %27 = arith.negf %26 : vector<8x128xf32>
    %28 = math.exp %27 : vector<8x128xf32>
    %cst_14 = arith.constant 1.000000e+00 : f32
    %29 = vector.broadcast %cst_14 : f32 to vector<8x128xf32>
    %30 = arith.addf %29, %28 : vector<8x128xf32>
    %31 = arith.divf %29, %30 : vector<8x128xf32>
    %32 = vector.extract_strided_slice %14 {offsets = [0, 256], sizes = [8, 128], strides = [1, 1]} : vector<8x384xf32> to vector<8x128xf32>
    %33 = vector.extract_strided_slice %15 {offsets = [0, 256], sizes = [8, 128], strides = [1, 1]} : vector<8x384xf32> to vector<8x128xf32>
    %34 = arith.addf %33, %12 : vector<8x128xf32>
    %35 = arith.mulf %23, %34 : vector<8x128xf32>
    %36 = arith.addf %32, %35 : vector<8x128xf32>
    %37 = math.tanh %36 : vector<8x128xf32>
    %cst_15 = arith.constant 1.000000e+00 : f32
    %38 = vector.broadcast %cst_15 : f32 to vector<8x128xf32>
    %39 = arith.subf %38, %31 : vector<8x128xf32>
    %40 = arith.mulf %39, %37 : vector<8x128xf32>
    %41 = arith.mulf %31, %13 : vector<8x128xf32>
    %42 = arith.addf %40, %41 : vector<8x128xf32>
    %43 = vector.extract_strided_slice %42 {offsets = [0, 0], sizes = [8, 32], strides = [1, 1]} : vector<8x128xf32> to vector<8x32xf32>
    %c0_16 = arith.constant 0 : index
    %c0_17 = arith.constant 0 : index
    %c0_18 = arith.constant 0 : index
    %44 = vector.load %arg6[%c0_16, %c0_17, %c0_18] : memref<8x8x32xf32, #tpu.memory_space<vmem>>, vector<1x8x32xf32>
    %45 = vector.shape_cast %44 : vector<1x8x32xf32> to vector<8x32xf32>
    %46 = vector.shape_cast %43 : vector<8x32xf32> to vector<1x8x32xf32>
    tpu.vector_store %arg6[%c0_16, %c0_17, %c0_18], %46 {strides = array<i32>} : memref<8x8x32xf32, #tpu.memory_space<vmem>>, vector<1x8x32xf32>,
    %47 = vector.extract_strided_slice %8 {offsets = [8, 0], sizes = [8, 384], strides = [1, 1]} : vector<64x384xf32> to vector<8x384xf32>
    %cst_19 = arith.constant dense<0.000000e+00> : vector<8x384xf32>
    %48 = tpu.matmul %42, %9, %cst_19 {dimension_numbers = #tpu.dot_dimension_numbers<[1], [0], [0], [1], [0, 0, 1, 1], [], []>} : vector<8x128xf32>, vector<128x384xf32>, vector<8x384xf32> -> vector<8x384xf32>
    %49 = vector.extract_strided_slice %47 {offsets = [0, 0], sizes = [8, 128], strides = [1, 1]} : vector<8x384xf32> to vector<8x128xf32>
    %50 = vector.extract_strided_slice %48 {offsets = [0, 0], sizes = [8, 128], strides = [1, 1]} : vector<8x384xf32> to vector<8x128xf32>
    %51 = arith.addf %49, %50 : vector<8x128xf32>
    %52 = arith.negf %51 : vector<8x128xf32>
    %53 = math.exp %52 : vector<8x128xf32>
    %cst_20 = arith.constant 1.000000e+00 : f32
    %54 = vector.broadcast %cst_20 : f32 to vector<8x128xf32>
    %55 = arith.addf %54, %53 : vector<8x128xf32>
    %56 = arith.divf %54, %55 : vector<8x128xf32>
    %57 = vector.extract_strided_slice %47 {offsets = [0, 128], sizes = [8, 128], strides = [1, 1]} : vector<8x384xf32> to vector<8x128xf32>
    %58 = vector.extract_strided_slice %48 {offsets = [0, 128], sizes = [8, 128], strides = [1, 1]} : vector<8x384xf32> to vector<8x128xf32>
    %59 = arith.addf %57, %58 : vector<8x128xf32>
    %60 = arith.negf %59 : vector<8x128xf32>
    %61 = math.exp %60 : vector<8x128xf32>
    %cst_21 = arith.constant 1.000000e+00 : f32
    %62 = vector.broadcast %cst_21 : f32 to vector<8x128xf32>
    %63 = arith.addf %62, %61 : vector<8x128xf32>
    %64 = arith.divf %62, %63 : vector<8x128xf32>
    %65 = vector.extract_strided_slice %47 {offsets = [0, 256], sizes = [8, 128], strides = [1, 1]} : vector<8x384xf32> to vector<8x128xf32>
    %66 = vector.extract_strided_slice %48 {offsets = [0, 256], sizes = [8, 128], strides = [1, 1]} : vector<8x384xf32> to vector<8x128xf32>
    %67 = arith.addf %66, %12 : vector<8x128xf32>
    %68 = arith.mulf %56, %67 : vector<8x128xf32>
    %69 = arith.addf %65, %68 : vector<8x128xf32>
    %70 = math.tanh %69 : vector<8x128xf32>
    %cst_22 = arith.constant 1.000000e+00 : f32
    %71 = vector.broadcast %cst_22 : f32 to vector<8x128xf32>
    %72 = arith.subf %71, %64 : vector<8x128xf32>
    %73 = arith.mulf %72, %70 : vector<8x128xf32>
    %74 = arith.mulf %64, %42 : vector<8x128xf32>
    %75 = arith.addf %73, %74 : vector<8x128xf32>
    %76 = vector.extract_strided_slice %75 {offsets = [0, 0], sizes = [8, 32], strides = [1, 1]} : vector<8x128xf32> to vector<8x32xf32>
    %c1 = arith.constant 1 : index
    %c0_23 = arith.constant 0 : index
    %c0_24 = arith.constant 0 : index
    %77 = vector.load %arg6[%c1, %c0_23, %c0_24] : memref<8x8x32xf32, #tpu.memory_space<vmem>>, vector<1x8x32xf32>
    %78 = vector.shape_cast %77 : vector<1x8x32xf32> to vector<8x32xf32>
    %79 = vector.shape_cast %76 : vector<8x32xf32> to vector<1x8x32xf32>
    tpu.vector_store %arg6[%c1, %c0_23, %c0_24], %79 {strides = array<i32>} : memref<8x8x32xf32, #tpu.memory_space<vmem>>, vector<1x8x32xf32>,
    %80 = vector.extract_strided_slice %8 {offsets = [16, 0], sizes = [8, 384], strides = [1, 1]} : vector<64x384xf32> to vector<8x384xf32>
    %cst_25 = arith.constant dense<0.000000e+00> : vector<8x384xf32>
    %81 = tpu.matmul %75, %9, %cst_25 {dimension_numbers = #tpu.dot_dimension_numbers<[1], [0], [0], [1], [0, 0, 1, 1], [], []>} : vector<8x128xf32>, vector<128x384xf32>, vector<8x384xf32> -> vector<8x384xf32>
    %82 = vector.extract_strided_slice %80 {offsets = [0, 0], sizes = [8, 128], strides = [1, 1]} : vector<8x384xf32> to vector<8x128xf32>
    %83 = vector.extract_strided_slice %81 {offsets = [0, 0], sizes = [8, 128], strides = [1, 1]} : vector<8x384xf32> to vector<8x128xf32>
    %84 = arith.addf %82, %83 : vector<8x128xf32>
    %85 = arith.negf %84 : vector<8x128xf32>
    %86 = math.exp %85 : vector<8x128xf32>
    %cst_26 = arith.constant 1.000000e+00 : f32
    %87 = vector.broadcast %cst_26 : f32 to vector<8x128xf32>
    %88 = arith.addf %87, %86 : vector<8x128xf32>
    %89 = arith.divf %87, %88 : vector<8x128xf32>
    %90 = vector.extract_strided_slice %80 {offsets = [0, 128], sizes = [8, 128], strides = [1, 1]} : vector<8x384xf32> to vector<8x128xf32>
    %91 = vector.extract_strided_slice %81 {offsets = [0, 128], sizes = [8, 128], strides = [1, 1]} : vector<8x384xf32> to vector<8x128xf32>
    %92 = arith.addf %90, %91 : vector<8x128xf32>
    %93 = arith.negf %92 : vector<8x128xf32>
    %94 = math.exp %93 : vector<8x128xf32>
    %cst_27 = arith.constant 1.000000e+00 : f32
    %95 = vector.broadcast %cst_27 : f32 to vector<8x128xf32>
    %96 = arith.addf %95, %94 : vector<8x128xf32>
    %97 = arith.divf %95, %96 : vector<8x128xf32>
    %98 = vector.extract_strided_slice %80 {offsets = [0, 256], sizes = [8, 128], strides = [1, 1]} : vector<8x384xf32> to vector<8x128xf32>
    %99 = vector.extract_strided_slice %81 {offsets = [0, 256], sizes = [8, 128], strides = [1, 1]} : vector<8x384xf32> to vector<8x128xf32>
    %100 = arith.addf %99, %12 : vector<8x128xf32>
    %101 = arith.mulf %89, %100 : vector<8x128xf32>
    %102 = arith.addf %98, %101 : vector<8x128xf32>
    %103 = math.tanh %102 : vector<8x128xf32>
    %cst_28 = arith.constant 1.000000e+00 : f32
    %104 = vector.broadcast %cst_28 : f32 to vector<8x128xf32>
    %105 = arith.subf %104, %97 : vector<8x128xf32>
    %106 = arith.mulf %105, %103 : vector<8x128xf32>
    %107 = arith.mulf %97, %75 : vector<8x128xf32>
    %108 = arith.addf %106, %107 : vector<8x128xf32>
    %109 = vector.extract_strided_slice %108 {offsets = [0, 0], sizes = [8, 32], strides = [1, 1]} : vector<8x128xf32> to vector<8x32xf32>
    %c2 = arith.constant 2 : index
    %c0_29 = arith.constant 0 : index
    %c0_30 = arith.constant 0 : index
    %110 = vector.load %arg6[%c2, %c0_29, %c0_30] : memref<8x8x32xf32, #tpu.memory_space<vmem>>, vector<1x8x32xf32>
    %111 = vector.shape_cast %110 : vector<1x8x32xf32> to vector<8x32xf32>
    %112 = vector.shape_cast %109 : vector<8x32xf32> to vector<1x8x32xf32>
    tpu.vector_store %arg6[%c2, %c0_29, %c0_30], %112 {strides = array<i32>} : memref<8x8x32xf32, #tpu.memory_space<vmem>>, vector<1x8x32xf32>,
    %113 = vector.extract_strided_slice %8 {offsets = [24, 0], sizes = [8, 384], strides = [1, 1]} : vector<64x384xf32> to vector<8x384xf32>
    %cst_31 = arith.constant dense<0.000000e+00> : vector<8x384xf32>
    %114 = tpu.matmul %108, %9, %cst_31 {dimension_numbers = #tpu.dot_dimension_numbers<[1], [0], [0], [1], [0, 0, 1, 1], [], []>} : vector<8x128xf32>, vector<128x384xf32>, vector<8x384xf32> -> vector<8x384xf32>
    %115 = vector.extract_strided_slice %113 {offsets = [0, 0], sizes = [8, 128], strides = [1, 1]} : vector<8x384xf32> to vector<8x128xf32>
    %116 = vector.extract_strided_slice %114 {offsets = [0, 0], sizes = [8, 128], strides = [1, 1]} : vector<8x384xf32> to vector<8x128xf32>
    %117 = arith.addf %115, %116 : vector<8x128xf32>
    %118 = arith.negf %117 : vector<8x128xf32>
    %119 = math.exp %118 : vector<8x128xf32>
    %cst_32 = arith.constant 1.000000e+00 : f32
    %120 = vector.broadcast %cst_32 : f32 to vector<8x128xf32>
    %121 = arith.addf %120, %119 : vector<8x128xf32>
    %122 = arith.divf %120, %121 : vector<8x128xf32>
    %123 = vector.extract_strided_slice %113 {offsets = [0, 128], sizes = [8, 128], strides = [1, 1]} : vector<8x384xf32> to vector<8x128xf32>
    %124 = vector.extract_strided_slice %114 {offsets = [0, 128], sizes = [8, 128], strides = [1, 1]} : vector<8x384xf32> to vector<8x128xf32>
    %125 = arith.addf %123, %124 : vector<8x128xf32>
    %126 = arith.negf %125 : vector<8x128xf32>
    %127 = math.exp %126 : vector<8x128xf32>
    %cst_33 = arith.constant 1.000000e+00 : f32
    %128 = vector.broadcast %cst_33 : f32 to vector<8x128xf32>
    %129 = arith.addf %128, %127 : vector<8x128xf32>
    %130 = arith.divf %128, %129 : vector<8x128xf32>
    %131 = vector.extract_strided_slice %113 {offsets = [0, 256], sizes = [8, 128], strides = [1, 1]} : vector<8x384xf32> to vector<8x128xf32>
    %132 = vector.extract_strided_slice %114 {offsets = [0, 256], sizes = [8, 128], strides = [1, 1]} : vector<8x384xf32> to vector<8x128xf32>
    %133 = arith.addf %132, %12 : vector<8x128xf32>
    %134 = arith.mulf %122, %133 : vector<8x128xf32>
    %135 = arith.addf %131, %134 : vector<8x128xf32>
    %136 = math.tanh %135 : vector<8x128xf32>
    %cst_34 = arith.constant 1.000000e+00 : f32
    %137 = vector.broadcast %cst_34 : f32 to vector<8x128xf32>
    %138 = arith.subf %137, %130 : vector<8x128xf32>
    %139 = arith.mulf %138, %136 : vector<8x128xf32>
    %140 = arith.mulf %130, %108 : vector<8x128xf32>
    %141 = arith.addf %139, %140 : vector<8x128xf32>
    %142 = vector.extract_strided_slice %141 {offsets = [0, 0], sizes = [8, 32], strides = [1, 1]} : vector<8x128xf32> to vector<8x32xf32>
    %c3 = arith.constant 3 : index
    %c0_35 = arith.constant 0 : index
    %c0_36 = arith.constant 0 : index
    %143 = vector.load %arg6[%c3, %c0_35, %c0_36] : memref<8x8x32xf32, #tpu.memory_space<vmem>>, vector<1x8x32xf32>
    %144 = vector.shape_cast %143 : vector<1x8x32xf32> to vector<8x32xf32>
    %145 = vector.shape_cast %142 : vector<8x32xf32> to vector<1x8x32xf32>
    tpu.vector_store %arg6[%c3, %c0_35, %c0_36], %145 {strides = array<i32>} : memref<8x8x32xf32, #tpu.memory_space<vmem>>, vector<1x8x32xf32>,
    %146 = vector.extract_strided_slice %8 {offsets = [32, 0], sizes = [8, 384], strides = [1, 1]} : vector<64x384xf32> to vector<8x384xf32>
    %cst_37 = arith.constant dense<0.000000e+00> : vector<8x384xf32>
    %147 = tpu.matmul %141, %9, %cst_37 {dimension_numbers = #tpu.dot_dimension_numbers<[1], [0], [0], [1], [0, 0, 1, 1], [], []>} : vector<8x128xf32>, vector<128x384xf32>, vector<8x384xf32> -> vector<8x384xf32>
    %148 = vector.extract_strided_slice %146 {offsets = [0, 0], sizes = [8, 128], strides = [1, 1]} : vector<8x384xf32> to vector<8x128xf32>
    %149 = vector.extract_strided_slice %147 {offsets = [0, 0], sizes = [8, 128], strides = [1, 1]} : vector<8x384xf32> to vector<8x128xf32>
    %150 = arith.addf %148, %149 : vector<8x128xf32>
    %151 = arith.negf %150 : vector<8x128xf32>
    %152 = math.exp %151 : vector<8x128xf32>
    %cst_38 = arith.constant 1.000000e+00 : f32
    %153 = vector.broadcast %cst_38 : f32 to vector<8x128xf32>
    %154 = arith.addf %153, %152 : vector<8x128xf32>
    %155 = arith.divf %153, %154 : vector<8x128xf32>
    %156 = vector.extract_strided_slice %146 {offsets = [0, 128], sizes = [8, 128], strides = [1, 1]} : vector<8x384xf32> to vector<8x128xf32>
    %157 = vector.extract_strided_slice %147 {offsets = [0, 128], sizes = [8, 128], strides = [1, 1]} : vector<8x384xf32> to vector<8x128xf32>
    %158 = arith.addf %156, %157 : vector<8x128xf32>
    %159 = arith.negf %158 : vector<8x128xf32>
    %160 = math.exp %159 : vector<8x128xf32>
    %cst_39 = arith.constant 1.000000e+00 : f32
    %161 = vector.broadcast %cst_39 : f32 to vector<8x128xf32>
    %162 = arith.addf %161, %160 : vector<8x128xf32>
    %163 = arith.divf %161, %162 : vector<8x128xf32>
    %164 = vector.extract_strided_slice %146 {offsets = [0, 256], sizes = [8, 128], strides = [1, 1]} : vector<8x384xf32> to vector<8x128xf32>
    %165 = vector.extract_strided_slice %147 {offsets = [0, 256], sizes = [8, 128], strides = [1, 1]} : vector<8x384xf32> to vector<8x128xf32>
    %166 = arith.addf %165, %12 : vector<8x128xf32>
    %167 = arith.mulf %155, %166 : vector<8x128xf32>
    %168 = arith.addf %164, %167 : vector<8x128xf32>
    %169 = math.tanh %168 : vector<8x128xf32>
    %cst_40 = arith.constant 1.000000e+00 : f32
    %170 = vector.broadcast %cst_40 : f32 to vector<8x128xf32>
    %171 = arith.subf %170, %163 : vector<8x128xf32>
    %172 = arith.mulf %171, %169 : vector<8x128xf32>
    %173 = arith.mulf %163, %141 : vector<8x128xf32>
    %174 = arith.addf %172, %173 : vector<8x128xf32>
    %175 = vector.extract_strided_slice %174 {offsets = [0, 0], sizes = [8, 32], strides = [1, 1]} : vector<8x128xf32> to vector<8x32xf32>
    %c4 = arith.constant 4 : index
    %c0_41 = arith.constant 0 : index
    %c0_42 = arith.constant 0 : index
    %176 = vector.load %arg6[%c4, %c0_41, %c0_42] : memref<8x8x32xf32, #tpu.memory_space<vmem>>, vector<1x8x32xf32>
    %177 = vector.shape_cast %176 : vector<1x8x32xf32> to vector<8x32xf32>
    %178 = vector.shape_cast %175 : vector<8x32xf32> to vector<1x8x32xf32>
    tpu.vector_store %arg6[%c4, %c0_41, %c0_42], %178 {strides = array<i32>} : memref<8x8x32xf32, #tpu.memory_space<vmem>>, vector<1x8x32xf32>,
    %179 = vector.extract_strided_slice %8 {offsets = [40, 0], sizes = [8, 384], strides = [1, 1]} : vector<64x384xf32> to vector<8x384xf32>
    %cst_43 = arith.constant dense<0.000000e+00> : vector<8x384xf32>
    %180 = tpu.matmul %174, %9, %cst_43 {dimension_numbers = #tpu.dot_dimension_numbers<[1], [0], [0], [1], [0, 0, 1, 1], [], []>} : vector<8x128xf32>, vector<128x384xf32>, vector<8x384xf32> -> vector<8x384xf32>
    %181 = vector.extract_strided_slice %179 {offsets = [0, 0], sizes = [8, 128], strides = [1, 1]} : vector<8x384xf32> to vector<8x128xf32>
    %182 = vector.extract_strided_slice %180 {offsets = [0, 0], sizes = [8, 128], strides = [1, 1]} : vector<8x384xf32> to vector<8x128xf32>
    %183 = arith.addf %181, %182 : vector<8x128xf32>
    %184 = arith.negf %183 : vector<8x128xf32>
    %185 = math.exp %184 : vector<8x128xf32>
    %cst_44 = arith.constant 1.000000e+00 : f32
    %186 = vector.broadcast %cst_44 : f32 to vector<8x128xf32>
    %187 = arith.addf %186, %185 : vector<8x128xf32>
    %188 = arith.divf %186, %187 : vector<8x128xf32>
    %189 = vector.extract_strided_slice %179 {offsets = [0, 128], sizes = [8, 128], strides = [1, 1]} : vector<8x384xf32> to vector<8x128xf32>
    %190 = vector.extract_strided_slice %180 {offsets = [0, 128], sizes = [8, 128], strides = [1, 1]} : vector<8x384xf32> to vector<8x128xf32>
    %191 = arith.addf %189, %190 : vector<8x128xf32>
    %192 = arith.negf %191 : vector<8x128xf32>
    %193 = math.exp %192 : vector<8x128xf32>
    %cst_45 = arith.constant 1.000000e+00 : f32
    %194 = vector.broadcast %cst_45 : f32 to vector<8x128xf32>
    %195 = arith.addf %194, %193 : vector<8x128xf32>
    %196 = arith.divf %194, %195 : vector<8x128xf32>
    %197 = vector.extract_strided_slice %179 {offsets = [0, 256], sizes = [8, 128], strides = [1, 1]} : vector<8x384xf32> to vector<8x128xf32>
    %198 = vector.extract_strided_slice %180 {offsets = [0, 256], sizes = [8, 128], strides = [1, 1]} : vector<8x384xf32> to vector<8x128xf32>
    %199 = arith.addf %198, %12 : vector<8x128xf32>
    %200 = arith.mulf %188, %199 : vector<8x128xf32>
    %201 = arith.addf %197, %200 : vector<8x128xf32>
    %202 = math.tanh %201 : vector<8x128xf32>
    %cst_46 = arith.constant 1.000000e+00 : f32
    %203 = vector.broadcast %cst_46 : f32 to vector<8x128xf32>
    %204 = arith.subf %203, %196 : vector<8x128xf32>
    %205 = arith.mulf %204, %202 : vector<8x128xf32>
    %206 = arith.mulf %196, %174 : vector<8x128xf32>
    %207 = arith.addf %205, %206 : vector<8x128xf32>
    %208 = vector.extract_strided_slice %207 {offsets = [0, 0], sizes = [8, 32], strides = [1, 1]} : vector<8x128xf32> to vector<8x32xf32>
    %c5 = arith.constant 5 : index
    %c0_47 = arith.constant 0 : index
    %c0_48 = arith.constant 0 : index
    %209 = vector.load %arg6[%c5, %c0_47, %c0_48] : memref<8x8x32xf32, #tpu.memory_space<vmem>>, vector<1x8x32xf32>
    %210 = vector.shape_cast %209 : vector<1x8x32xf32> to vector<8x32xf32>
    %211 = vector.shape_cast %208 : vector<8x32xf32> to vector<1x8x32xf32>
    tpu.vector_store %arg6[%c5, %c0_47, %c0_48], %211 {strides = array<i32>} : memref<8x8x32xf32, #tpu.memory_space<vmem>>, vector<1x8x32xf32>,
    %212 = vector.extract_strided_slice %8 {offsets = [48, 0], sizes = [8, 384], strides = [1, 1]} : vector<64x384xf32> to vector<8x384xf32>
    %cst_49 = arith.constant dense<0.000000e+00> : vector<8x384xf32>
    %213 = tpu.matmul %207, %9, %cst_49 {dimension_numbers = #tpu.dot_dimension_numbers<[1], [0], [0], [1], [0, 0, 1, 1], [], []>} : vector<8x128xf32>, vector<128x384xf32>, vector<8x384xf32> -> vector<8x384xf32>
    %214 = vector.extract_strided_slice %212 {offsets = [0, 0], sizes = [8, 128], strides = [1, 1]} : vector<8x384xf32> to vector<8x128xf32>
    %215 = vector.extract_strided_slice %213 {offsets = [0, 0], sizes = [8, 128], strides = [1, 1]} : vector<8x384xf32> to vector<8x128xf32>
    %216 = arith.addf %214, %215 : vector<8x128xf32>
    %217 = arith.negf %216 : vector<8x128xf32>
    %218 = math.exp %217 : vector<8x128xf32>
    %cst_50 = arith.constant 1.000000e+00 : f32
    %219 = vector.broadcast %cst_50 : f32 to vector<8x128xf32>
    %220 = arith.addf %219, %218 : vector<8x128xf32>
    %221 = arith.divf %219, %220 : vector<8x128xf32>
    %222 = vector.extract_strided_slice %212 {offsets = [0, 128], sizes = [8, 128], strides = [1, 1]} : vector<8x384xf32> to vector<8x128xf32>
    %223 = vector.extract_strided_slice %213 {offsets = [0, 128], sizes = [8, 128], strides = [1, 1]} : vector<8x384xf32> to vector<8x128xf32>
    %224 = arith.addf %222, %223 : vector<8x128xf32>
    %225 = arith.negf %224 : vector<8x128xf32>
    %226 = math.exp %225 : vector<8x128xf32>
    %cst_51 = arith.constant 1.000000e+00 : f32
    %227 = vector.broadcast %cst_51 : f32 to vector<8x128xf32>
    %228 = arith.addf %227, %226 : vector<8x128xf32>
    %229 = arith.divf %227, %228 : vector<8x128xf32>
    %230 = vector.extract_strided_slice %212 {offsets = [0, 256], sizes = [8, 128], strides = [1, 1]} : vector<8x384xf32> to vector<8x128xf32>
    %231 = vector.extract_strided_slice %213 {offsets = [0, 256], sizes = [8, 128], strides = [1, 1]} : vector<8x384xf32> to vector<8x128xf32>
    %232 = arith.addf %231, %12 : vector<8x128xf32>
    %233 = arith.mulf %221, %232 : vector<8x128xf32>
    %234 = arith.addf %230, %233 : vector<8x128xf32>
    %235 = math.tanh %234 : vector<8x128xf32>
    %cst_52 = arith.constant 1.000000e+00 : f32
    %236 = vector.broadcast %cst_52 : f32 to vector<8x128xf32>
    %237 = arith.subf %236, %229 : vector<8x128xf32>
    %238 = arith.mulf %237, %235 : vector<8x128xf32>
    %239 = arith.mulf %229, %207 : vector<8x128xf32>
    %240 = arith.addf %238, %239 : vector<8x128xf32>
    %241 = vector.extract_strided_slice %240 {offsets = [0, 0], sizes = [8, 32], strides = [1, 1]} : vector<8x128xf32> to vector<8x32xf32>
    %c6 = arith.constant 6 : index
    %c0_53 = arith.constant 0 : index
    %c0_54 = arith.constant 0 : index
    %242 = vector.load %arg6[%c6, %c0_53, %c0_54] : memref<8x8x32xf32, #tpu.memory_space<vmem>>, vector<1x8x32xf32>
    %243 = vector.shape_cast %242 : vector<1x8x32xf32> to vector<8x32xf32>
    %244 = vector.shape_cast %241 : vector<8x32xf32> to vector<1x8x32xf32>
    tpu.vector_store %arg6[%c6, %c0_53, %c0_54], %244 {strides = array<i32>} : memref<8x8x32xf32, #tpu.memory_space<vmem>>, vector<1x8x32xf32>,
    %245 = vector.extract_strided_slice %8 {offsets = [56, 0], sizes = [8, 384], strides = [1, 1]} : vector<64x384xf32> to vector<8x384xf32>
    %cst_55 = arith.constant dense<0.000000e+00> : vector<8x384xf32>
    %246 = tpu.matmul %240, %9, %cst_55 {dimension_numbers = #tpu.dot_dimension_numbers<[1], [0], [0], [1], [0, 0, 1, 1], [], []>} : vector<8x128xf32>, vector<128x384xf32>, vector<8x384xf32> -> vector<8x384xf32>
    %247 = vector.extract_strided_slice %245 {offsets = [0, 0], sizes = [8, 128], strides = [1, 1]} : vector<8x384xf32> to vector<8x128xf32>
    %248 = vector.extract_strided_slice %246 {offsets = [0, 0], sizes = [8, 128], strides = [1, 1]} : vector<8x384xf32> to vector<8x128xf32>
    %249 = arith.addf %247, %248 : vector<8x128xf32>
    %250 = arith.negf %249 : vector<8x128xf32>
    %251 = math.exp %250 : vector<8x128xf32>
    %cst_56 = arith.constant 1.000000e+00 : f32
    %252 = vector.broadcast %cst_56 : f32 to vector<8x128xf32>
    %253 = arith.addf %252, %251 : vector<8x128xf32>
    %254 = arith.divf %252, %253 : vector<8x128xf32>
    %255 = vector.extract_strided_slice %245 {offsets = [0, 128], sizes = [8, 128], strides = [1, 1]} : vector<8x384xf32> to vector<8x128xf32>
    %256 = vector.extract_strided_slice %246 {offsets = [0, 128], sizes = [8, 128], strides = [1, 1]} : vector<8x384xf32> to vector<8x128xf32>
    %257 = arith.addf %255, %256 : vector<8x128xf32>
    %258 = arith.negf %257 : vector<8x128xf32>
    %259 = math.exp %258 : vector<8x128xf32>
    %cst_57 = arith.constant 1.000000e+00 : f32
    %260 = vector.broadcast %cst_57 : f32 to vector<8x128xf32>
    %261 = arith.addf %260, %259 : vector<8x128xf32>
    %262 = arith.divf %260, %261 : vector<8x128xf32>
    %263 = vector.extract_strided_slice %245 {offsets = [0, 256], sizes = [8, 128], strides = [1, 1]} : vector<8x384xf32> to vector<8x128xf32>
    %264 = vector.extract_strided_slice %246 {offsets = [0, 256], sizes = [8, 128], strides = [1, 1]} : vector<8x384xf32> to vector<8x128xf32>
    %265 = arith.addf %264, %12 : vector<8x128xf32>
    %266 = arith.mulf %254, %265 : vector<8x128xf32>
    %267 = arith.addf %263, %266 : vector<8x128xf32>
    %268 = math.tanh %267 : vector<8x128xf32>
    %cst_58 = arith.constant 1.000000e+00 : f32
    %269 = vector.broadcast %cst_58 : f32 to vector<8x128xf32>
    %270 = arith.subf %269, %262 : vector<8x128xf32>
    %271 = arith.mulf %270, %268 : vector<8x128xf32>
    %272 = arith.mulf %262, %240 : vector<8x128xf32>
    %273 = arith.addf %271, %272 : vector<8x128xf32>
    %274 = vector.extract_strided_slice %273 {offsets = [0, 0], sizes = [8, 32], strides = [1, 1]} : vector<8x128xf32> to vector<8x32xf32>
    %c7 = arith.constant 7 : index
    %c0_59 = arith.constant 0 : index
    %c0_60 = arith.constant 0 : index
    %275 = vector.load %arg6[%c7, %c0_59, %c0_60] : memref<8x8x32xf32, #tpu.memory_space<vmem>>, vector<1x8x32xf32>
    %276 = vector.shape_cast %275 : vector<1x8x32xf32> to vector<8x32xf32>
    %277 = vector.shape_cast %274 : vector<8x32xf32> to vector<1x8x32xf32>
    tpu.vector_store %arg6[%c7, %c0_59, %c0_60], %277 {strides = array<i32>} : memref<8x8x32xf32, #tpu.memory_space<vmem>>, vector<1x8x32xf32>,
    %c0_61 = arith.constant 0 : index
    %c0_62 = arith.constant 0 : index
    %278 = vector.load %arg7[%c0_61, %c0_62] : memref<8x128xf32, #tpu.memory_space<vmem>>, vector<8x128xf32>
    tpu.vector_store %arg7[%c0_61, %c0_62], %273 {strides = array<i32>} : memref<8x128xf32, #tpu.memory_space<vmem>>, vector<8x128xf32>,
    return
  }
  func.func @transform_0(%arg0: i32) -> (i32, i32) {
    %c0_i32 = arith.constant 0 : i32
    %c0_i32_0 = arith.constant 0 : i32
    return %arg0, %c0_i32 : i32, i32
  }
  func.func @transform_1(%arg0: i32) -> (i32, i32) {
    %c0_i32 = arith.constant 0 : i32
    %c0_i32_0 = arith.constant 0 : i32
    %c0_i32_1 = arith.constant 0 : i32
    return %c0_i32, %c0_i32_0 : i32, i32
  }
  func.func @transform_2(%arg0: i32) -> (i32, i32) {
    %c0_i32 = arith.constant 0 : i32
    %c0_i32_0 = arith.constant 0 : i32
    %c0_i32_1 = arith.constant 0 : i32
    return %c0_i32, %c0_i32_0 : i32, i32
  }
  func.func @transform_3(%arg0: i32) -> (i32, i32) {
    %c0_i32 = arith.constant 0 : i32
    %c0_i32_0 = arith.constant 0 : i32
    %c0_i32_1 = arith.constant 0 : i32
    return %c0_i32, %c0_i32_0 : i32, i32
  }
  func.func @transform_4(%arg0: i32) -> (i32, i32) {
    %c0_i32 = arith.constant 0 : i32
    %c0_i32_0 = arith.constant 0 : i32
    %c0_i32_1 = arith.constant 0 : i32
    return %c0_i32, %c0_i32_0 : i32, i32
  }
  func.func @transform_5(%arg0: i32) -> (i32, i32, i32) {
    %c0_i32 = arith.constant 0 : i32
    %c0_i32_0 = arith.constant 0 : i32
    %c0_i32_1 = arith.constant 0 : i32
    return %arg0, %c0_i32, %c0_i32_0 : i32, i32, i32
  }
}

</mosaic_0001>

<bundles_post_ra>
// kernel: tpu_custom_call.1
= control target key start
LH: loop header
LB: loop body
LE: loop exit
PB: predicated region body
PF: predicated region fallthrough
CT: control target
= control target key end

     0   :  { %10 = vsyncpa [#allocation4], 0  ;;  %s3353_s0 = inlined_call_operand.vmem [shape: f32[64,4], index: 0, kind: input, shape index: {}]   ;;  %s3354_s1 = inlined_call_operand.vmem [shape: f32[4,384], index: 1, kind: input, shape index: {}]   ;;  %s3355_s2 = inlined_call_operand.hbm [shape: f32[128,384], index: 2, kind: input, shape index: {}]   ;;  %s3356_s3 = inlined_call_operand.vmem [shape: f32[1,384], index: 3, kind: input, shape index: {}]   ;;  %s3357_s4 = inlined_call_operand.vmem [shape: f32[1,128], index: 4, kind: input, shape index: {}]   ;;  %s3358_s5 = inlined_call_operand.hbm [shape: f32[8,8,32], index: 5, kind: output, shape index: {}]  }
   0x1   :  { %11 = vsyncpa [#allocation5], 0  ;;  %s2807_s18 = smov [#allocation3]   ;;  %s2759_s22 = scalar_lea.hbm %s3355_s2, 6144 }
   0x2   :  { %s21_s19 = sshll.u32 %s2807_s18, 4  ;;  %p2760_p0 = scmp.ne.s32.totalorder %s3355_s2, %s2759_s22  ;;  %s22_s19 = int_to_ptr.vmem [resolvable:$true] %s21_s19 }
   0x3   :  { %p2763_p1 = scmp.lt.u32.totalorder %s2759_s22, %s3355_s2 }
   0x5   :  { %p2765_p2 = pnand %p2763_p1, %p2760_p0 }
   0x7   :  { %2768 = shalt.err (!%p2765_p2)
}
   0x8   :  { %s2769_s27 = scalar_lea.vmem %s22_s19, 6144  ;;  %p2774_p4 = scmp.lt.s32.totalorder %s22_s19, %s22_s19 }
   0x9   :  { %p2770_p3 = scmp.ne.s32.totalorder %s22_s19, %s2769_s27  ;;  %p2775_p5 = scmp.lt.s32.totalorder %s2769_s27, %s2769_s27 }
   0xb   :  { %p2776_p6 = por %p2775_p5, %p2774_p4 }
   0xd   :  { %p2777_p7 = pnand %p2776_p6, %p2770_p3 }
   0xf   :  { %2780 = shalt.err (!%p2777_p7)
}
  0x10   :  { %s2808_s28 = smov 384   ;;  %s2809_s29 = smov 24  }
  0x11   :  { %27 = dma.hbm_to_vmem [thread:$0]  %s3355_s2, 6144, %s22_s19, [#allocation4], %s2808_s28, %s2808_s28, %s2809_s29  }
  0x12   :  { %2803 = dma.done.wait [#allocation4], 6144  }
  0x13   :  { %2804 = vsyncadd [#allocation4], 4294961152  ;;  %v2810_v0 = vmov 0.0   ;;  %v48_v1 = vld [vmem:[%s3354_s1] sm:$0xff]  ;;  %vm95_vm0 = vcmask 1043456   ;;  %vm70_vm1 = vcmask 31744  }
  0x14   :  { %166 = vmatprep.mubr.f32.mxu0 %v2810_v0  ;;  %v40_v2 = vld [vmem:[%s3353_s0] sm:$0xff]  ;;  %v321_v3 = vld [vmem:[#allocation3 + $0x8] sm:$0xff]  ;;  %v69_v4 = vcombine.high %v48_v1, %v48_v1  ;;  %v323_v7 = vld [vmem:[#allocation3 + $0x18] sm:$0xff]  ;;  %v2811_v34 = vmov 0.0|0.0   ;;  %vm2812_vm2 = vmmov 0   ;;  %vm539_vm3 = vcmask 261120  }
  0x15   :  { %v324_v5 = vld [vmem:[#allocation3 + $0x20] sm:$0xff]  ;;  %1897 = vmatprep.mubr.msk.f32.mxu1 %vm70_vm1, %v40_v2  ;;  %v327_v10 = vld [vmem:[#allocation3 + $0x38] sm:$0xff]  ;;  %v330_v11 = vld [vmem:[#allocation3 + $0x50] sm:$0xff] }
  0x16   :  { %v320_v6 = vld [vmem:[#allocation3] sm:$0xff]  ;;  %v2866_v8 = vpack.c.bf16 %v324_v5, %v321_v3  ;;  %1714 = vmatprep.subr.msk.mxu0 %vm95_vm0, %v69_v4  ;;  %v2871_v12 = vpack.c.bf16 %v330_v11, %v327_v10  ;;  %v326_v13 = vld [vmem:[#allocation3 + $0x30] sm:$0xff]  ;;  %v329_v14 = vld [vmem:[#allocation3 + $0x48] sm:$0xff] }
  0x17   :  { %v2868_v9 = vpack.c.bf16 %v323_v7, %v320_v6  ;;  %1715 = vmatpush1.msk.msra.mxu0 %vm95_vm0, %v48_v1  ;;  %v333_v15 = vld [vmem:[#allocation3 + $0x68] sm:$0xff]  ;;  %v336_v16 = vld [vmem:[#allocation3 + $0x80] sm:$0xff]  ;;  %v2881_v18 = vpack.c.bf16 %v329_v14, %v326_v13  ;;  %v335_v21 = vld [vmem:[#allocation3 + $0x78] sm:$0xff] }
  0x18   :  { %1716 = vmatmul.mubr.msk.f32.vlgmr.msra.gmra.mrb[0].mxu0 %vm70_vm1, %v40_v2  ;;  %2190 = vmatprep.subr.bf16.mxu0 %v2866_v8  ;;  %v41_v17 = vld [vmem:[%s3353_s0 + $0x8] sm:$0xff]  ;;  %v2884_v19 = vpack.c.bf16 %v336_v16, %v333_v15  ;;  %v332_v20 = vld [vmem:[#allocation3 + $0x60] sm:$0xff]  ;;  %v339_v22 = vld [vmem:[#allocation3 + $0x98] sm:$0xff] }
  0x19   :  { %2192 = vmatpush1.bf16.msra.mxu0 %v2868_v9  ;;  %172 = vmatprep.mubr.f32.mxu0 %v2810_v0  ;;  %v342_v23 = vld [vmem:[#allocation3 + $0xb0] sm:$0xff]  ;;  %v2892_v25 = vpack.c.bf16 %v335_v21, %v332_v20  ;;  %v49_v26 = vld [vmem:[%s3354_s1 + $0x8] sm:$0xf]  ;;  %v348_v31 = vld [vmem:[#allocation3 + $0xe0] sm:$0xff] }
  0x1a   :  { %2194 = vmatprep.subr.bf16.mxu0 %v2871_v12  ;;  %v42_v24 = vld [vmem:[%s3353_s0 + $0x10] sm:$0xff]  ;;  %v2898_v27 = vpack.c.bf16 %v342_v23, %v339_v22  ;;  %v341_v29 = vld [vmem:[#allocation3 + $0xa8] sm:$0xff]  ;;  %1895 = vmatprep.subr.msk.mxu1 %vm95_vm0, %v49_v26  ;;  %v43_v36 = vld [vmem:[%s3353_s0 + $0x18] sm:$0xff] }
  0x1b   :  { %v338_v28 = vld [vmem:[#allocation3 + $0x90] sm:$0xff]  ;;  %v345_v30 = vld [vmem:[#allocation3 + $0xc8] sm:$0xff]  ;;  %1896 = vmatpush3.msk.msra.mxu1 %vm95_vm0, %v49_v26  ;;  %v328_v38 = vld [vmem:[#allocation3 + $0x40] sm:$0xff] }
  0x1c   :  { %1717 = vmatmul.mubr.msk.f32.gmra.mrb[2].mxu0 %vm70_vm1, %v41_v17  ;;  %v322_v32 = vld [vmem:[#allocation3 + $0x10] sm:$0xff]  ;;  %v325_v33 = vld [vmem:[#allocation3 + $0x28] sm:$0xff]  ;;  %2221 = vmatprep.subr.bf16.mxu1 %v2811_v34  ;;  %v2911_v37 = vpack.c.bf16 %v341_v29, %v338_v28  ;;  %v2914_v39 = vpack.c.bf16 %v348_v31, %v345_v30  ;;  %v344_v40 = vld [vmem:[#allocation3 + $0xc0] sm:$0xff]  ;;  %v52_v29 = vlaneseq }
  0x1d   :  { %2196 = vmatpush1.bf16.msra.mxu0 %v2881_v18  ;;  %178 = vmatprep.mubr.f32.mxu0 %v2810_v0  ;;  %v2904_v35 = vpack.c.bf16 %v325_v33, %v322_v32  ;;  %v347_v41 = vld [vmem:[#allocation3 + $0xd8] sm:$0xff]  ;;  %v354_v44 = vld [vmem:[#allocation3 + $0x110] sm:$0xff]  ;;  %v337_v47 = vld [vmem:[#allocation3 + $0x88] sm:$0xff] }
  0x1e   :  { %2198 = vmatprep.subr.bf16.mxu0 %v2884_v19  ;;  %1898 = vmatmul.mubr.msk.f32.vlgmr.msra.gmra.mrb[0].mxu1 %vm70_vm1, %v41_v17  ;;  %v331_v42 = vld [vmem:[#allocation3 + $0x58] sm:$0xff]  ;;  %v334_v46 = vld [vmem:[#allocation3 + $0x70] sm:$0xff]  ;;  %v44_v48 = vld [vmem:[%s3353_s0 + $0x20] sm:$0xff]  ;;  %v2928_v49 = vpack.c.bf16 %v347_v41, %v344_v40  ;;  %v53_v30 = vshrl.u32 %v52_v29, 7 }
  0x1f   :  { %v351_v43 = vld [vmem:[#allocation3 + $0xf8] sm:$0xff]  ;;  %2223 = vmatpush3.bf16.msra.mxu1 %v2904_v35  ;;  %v2918_v45 = vpack.c.bf16 %v331_v42, %v328_v38  ;;  %1900 = vmatprep.mubr.msk.f32.mxu1 %vm70_vm1, %v42_v24  ;;  %v350_v51 = vld [vmem:[#allocation3 + $0xf0] sm:$0xff]  ;;  %v353_v52 = vld [vmem:[#allocation3 + $0x108] sm:$0xff]  ;;  %v2935_v55 = vpack.c.bf16 %v337_v47, %v334_v46 }
  0x20   :  { %1718 = vmatmul.mubr.msk.f32.gmra.mrb[4].mxu0 %vm70_vm1, %v42_v24  ;;  %2224 = vmatprep.subr.bf16.mxu1 %v2811_v34  ;;  %v2931_v50 = vpack.c.bf16 %v354_v44, %v351_v43  ;;  %v357_v53 = vld [vmem:[#allocation3 + $0x128] sm:$0xff]  ;;  %v360_v54 = vld [vmem:[#allocation3 + $0x140] sm:$0xff]  ;;  %v343_v57 = vld [vmem:[#allocation3 + $0xb8] sm:$0xff]  ;;  %v2945_v59 = vpack.c.bf16 %v353_v52, %v350_v51  ;;  %v62_v31 = vsub.s32 2, %v53_v30 }
  0x21   :  { %2200 = vmatpush1.bf16.msra.mxu0 %v2892_v25  ;;  %184 = vmatprep.mubr.f32.mxu0 %v2810_v0  ;;  %v340_v56 = vld [vmem:[#allocation3 + $0xa0] sm:$0xff]  ;;  %v45_v58 = vld [vmem:[%s3353_s0 + $0x28] sm:$0xff]  ;;  %v46_v60 = vld [vmem:[%s3353_s0 + $0x30] sm:$0xff]  ;;  %v2951_v61 = vpack.c.bf16 %v360_v54, %v357_v53 }
  0x22   :  { %2202 = vmatprep.subr.bf16.mxu0 %v2898_v27  ;;  %1901 = vmatmul.mubr.msk.f32.gmra.mrb[2].mxu1 %vm70_vm1, %v43_v36  ;;  %v356_v62 = vld [vmem:[#allocation3 + $0x120] sm:$0xff]  ;;  %v359_v63 = vld [vmem:[#allocation3 + $0x138] sm:$0xff]  ;;  %v366_v2 = vld [vmem:[#allocation3 + $0x170] sm:$0xff]  ;;  %v2955_v3 = vpack.c.bf16 %v343_v57, %v340_v56  ;;  %v54_v57 = vsub.s32 0, %v53_v30 }
  0x23   :  { %2226 = vmatpush3.bf16.msra.mxu1 %v2918_v45  ;;  %1903 = vmatprep.mubr.msk.f32.mxu1 %vm70_vm1, %v44_v48  ;;  %v363_v1 = vld [vmem:[#allocation3 + $0x158] sm:$0xff]  ;;  %v346_v4 = vld [vmem:[#allocation3 + $0xd0] sm:$0xff]  ;;  %v349_v5 = vld [vmem:[#allocation3 + $0xe8] sm:$0xff]  ;;  %v2962_v6 = vpack.c.bf16 %v359_v63, %v356_v62 }
  0x24   :  { %1719 = vmatmul.mubr.msk.f32.gmra.mrb[6].mxu0 %vm70_vm1, %v43_v36  ;;  %2227 = vmatprep.subr.bf16.mxu1 %v2811_v34  ;;  %v47_v7 = vld [vmem:[%s3353_s0 + $0x38] sm:$0xff]  ;;  %v2968_v10 = vpack.c.bf16 %v366_v2, %v363_v1  ;;  %v362_v11 = vld [vmem:[#allocation3 + $0x150] sm:$0xff]  ;;  %v365_v13 = vld [vmem:[#allocation3 + $0x168] sm:$0xff]  ;;  %v2972_v14 = vpack.c.bf16 %v349_v5, %v346_v4 }
  0x25   :  { %2204 = vmatpush1.bf16.msra.mxu0 %v2911_v37  ;;  %190 = vmatprep.mubr.f32.mxu0 %v2810_v0  ;;  %v352_v15 = vld [vmem:[#allocation3 + $0x100] sm:$0xff]  ;;  %v355_v16 = vld [vmem:[#allocation3 + $0x118] sm:$0xff]  ;;  %v2980_v17 = vpack.c.bf16 %v365_v13, %v362_v11  ;;  %v358_v21 = vld [vmem:[#allocation3 + $0x130] sm:$0xff] }
  0x26   :  { %2206 = vmatprep.subr.bf16.mxu0 %v2914_v39  ;;  %1904 = vmatmul.mubr.msk.f32.gmra.mrb[4].mxu1 %vm70_vm1, %v45_v58  ;;  %v2984_v20 = vpack.c.bf16 %v355_v16, %v352_v15  ;;  %v361_v22 = vld [vmem:[#allocation3 + $0x148] sm:$0xff]  ;;  %v364_v24 = vld [vmem:[#allocation3 + $0x160] sm:$0xff]  ;;  %v367_v26 = vld [vmem:[#allocation3 + $0x178] sm:$0xff] }
  0x27   :  { %2229 = vmatpush3.bf16.msra.mxu1 %v2935_v55  ;;  %1906 = vmatprep.mubr.msk.f32.mxu1 %vm70_vm1, %v46_v60  ;;  %v2992_v23 = vpack.c.bf16 %v361_v22, %v358_v21  ;;  %v3000_v28 = vpack.c.bf16 %v367_v26, %v364_v24  ;;  %v50_v32 = vld [vmem:[%s3356_s3] sm:$0x7] }
  0x28   :  { %1720 = vmatmul.mubr.msk.f32.gmra.mrb[8].mxu0 %vm70_vm1, %v44_v48  ;;  %2230 = vmatprep.subr.bf16.mxu1 %v2811_v34  ;;  %v63_v33 = vrot.slane %v50_v32, %v62_v31  ;;  %v3064_v22 = vld [vmem:[%s3357_s4] ss:$0 sm:$0xff]  ;;  %s2813_s4 = smov [#allocation6]  }
  0x29   :  { %2208 = vmatpush1.bf16.msra.mxu0 %v2928_v49  ;;  %196 = vmatprep.mubr.f32.mxu0 %v2810_v0  ;;  %s1702_s27 = sshll.u32 %s2813_s4, 4  ;;  %s1703_s27 = int_to_ptr.vmem [resolvable:$true] %s1702_s27 }
  0x2a   :  { %2210 = vmatprep.subr.bf16.mxu0 %v2931_v50  ;;  %1907 = vmatmul.mubr.msk.f32.gmra.mrb[6].mxu1 %vm70_vm1, %v47_v7  ;;  %s2781_s28 = scalar_lea.vmem %s1703_s27, 1024  ;;  %p2786_p9 = scmp.lt.s32.totalorder %s1703_s27, %s1703_s27 }
  0x2b   :  { %2232 = vmatpush3.bf16.msra.mxu1 %v2955_v3  ;;  %1941 = vmatprep.mubr.msk.f32.mxu1 %vm2812_vm2, %v2810_v0  ;;  %p2782_p8 = scmp.ne.s32.totalorder %s1703_s27, %s2781_s28  ;;  %p2787_p10 = scmp.lt.s32.totalorder %s2781_s28, %s2781_s28 }
  0x2c   :  { %1721 = vmatmul.mubr.msk.f32.gmra.mrb[10].mxu0 %vm70_vm1, %v45_v58  ;;  %2233 = vmatprep.subr.bf16.mxu1 %v2811_v34  ;;  %v58_v58 = vsub.s32 1, %v53_v30 }
  0x2d   :  { %2212 = vmatpush1.bf16.msra.mxu0 %v2945_v59  ;;  %202 = vmatprep.mubr.f32.mxu0 %v2810_v0  ;;  %p2788_p11 = por %p2787_p10, %p2786_p9 }
  0x2e   :  { %2214 = vmatprep.subr.bf16.mxu0 %v2951_v61  ;;  %v3057_v63 = vrot.slane %v50_v32, %v58_v58 }
  0x2f   :  { %2235 = vmatpush3.bf16.msra.mxu1 %v2972_v14  ;;  %p2789_p12 = pnand %p2788_p11, %p2782_p8 }
  0x30   :  { %1722 = vmatmul.mubr.msk.f32.gmra.mrb[12].mxu0 %vm70_vm1, %v46_v60  ;;  %2236 = vmatprep.subr.bf16.mxu1 %v2811_v34  ;;  %v3055_v60 = vrot.slane %v50_v32, %v54_v57 }
  0x31   :  { %2216 = vmatpush1.bf16.msra.mxu0 %v2962_v6  ;;  %208 = vmatprep.mubr.f32.mxu0 %v2810_v0 }
  0x32   :  { %2218 = vmatprep.subr.bf16.mxu0 %v2968_v10 }
  0x33   :  { %2238 = vmatpush3.bf16.msra.mxu1 %v2984_v20 }
  0x34   :  { %1723 = vmatmul.mubr.msk.f32.gmra.mrb[14].mxu0 %vm70_vm1, %v47_v7  ;;  %2239 = vmatprep.subr.bf16.mxu1 %v2811_v34 }
  0x35   :  { %2220 = vmatpush1.bf16.msra.mxu0 %v2980_v17  ;;  %440 = vmatprep.mubr.f32.mxu0 %v2810_v0 }
  0x36   :  { %2246 = vmatprep.subr.bf16.mxu0 %v2866_v8 }
  0x37   :  { %2241 = vmatpush3.bf16.msra.mxu1 %v2992_v23 }
  0x38   :  { %441 = vmatmul.mubr.f32.vlgmr.msra.gmra.mrb[0].mxu0 %v2810_v0  ;;  %2242 = vmatprep.subr.bf16.mxu1 %v2811_v34 }
  0x39   :  { %2248 = vmatpush1.bf16.msra.mxu0 %v2868_v9  ;;  %605 = vmatprep.mubr.f32.mxu0 %v2810_v0 }
  0x3a   :  { %2250 = vmatprep.subr.bf16.mxu0 %v2871_v12 }
  0x3b   :  { %2244 = vmatpush3.bf16.msra.mxu1 %v3000_v28 }
  0x3c   :  { %2277 = vmatprep.subr.bf16.mxu1 %v2811_v34 }
  0x3d   :  { %2252 = vmatpush1.bf16.msra.mxu0 %v2881_v18 }
  0x3e   :  { %2254 = vmatprep.subr.bf16.mxu0 %v2884_v19  ;;  %1942 = vmatmul.mubr.f32.vlgmr.msra.gmra.mrb[8].mxu1 %v2810_v0 }
  0x3f   :  { %2279 = vmatpush3.bf16.msra.mxu1 %v2904_v35  ;;  %1976 = vmatprep.mubr.msk.f32.mxu1 %vm2812_vm2, %v2810_v0 }
  0x40   :  { %2280 = vmatprep.subr.bf16.mxu1 %v2811_v34 }
  0x41   :  { %2256 = vmatpush1.bf16.msra.mxu0 %v2892_v25 }
  0x42   :  { %2258 = vmatprep.subr.bf16.mxu0 %v2898_v27 }
  0x43   :  { %2282 = vmatpush3.bf16.msra.mxu1 %v2918_v45 }
  0x44   :  { %2283 = vmatprep.subr.bf16.mxu1 %v2811_v34 }
  0x45   :  { %2260 = vmatpush1.bf16.msra.mxu0 %v2911_v37 }
  0x46   :  { %2262 = vmatprep.subr.bf16.mxu0 %v2914_v39 }
  0x47   :  { %2285 = vmatpush3.bf16.msra.mxu1 %v2935_v55 }
  0x48   :  { %2286 = vmatprep.subr.bf16.mxu1 %v2811_v34 }
  0x49   :  { %2264 = vmatpush1.bf16.msra.mxu0 %v2928_v49 }
  0x4a   :  { %2266 = vmatprep.subr.bf16.mxu0 %v2931_v50 }
  0x4b   :  { %2288 = vmatpush3.bf16.msra.mxu1 %v2955_v3 }
  0x4c   :  { %2289 = vmatprep.subr.bf16.mxu1 %v2811_v34 }
  0x4d   :  { %2268 = vmatpush1.bf16.msra.mxu0 %v2945_v59 }
  0x4e   :  { %2270 = vmatprep.subr.bf16.mxu0 %v2951_v61 }
  0x4f   :  { %2291 = vmatpush3.bf16.msra.mxu1 %v2972_v14 }
  0x50   :  { %2292 = vmatprep.subr.bf16.mxu1 %v2811_v34 }
  0x51   :  { %2272 = vmatpush1.bf16.msra.mxu0 %v2962_v6 }
  0x52   :  { %2274 = vmatprep.subr.bf16.mxu0 %v2968_v10 }
  0x53   :  { %2294 = vmatpush3.bf16.msra.mxu1 %v2984_v20 }
  0x54   :  { %2295 = vmatprep.subr.bf16.mxu1 %v2811_v34 }
  0x55   :  { %2276 = vmatpush1.bf16.msra.mxu0 %v2980_v17 }
  0x56   :  { %2302 = vmatprep.subr.bf16.mxu0 %v2866_v8 }
  0x57   :  { %2297 = vmatpush3.bf16.msra.mxu1 %v2992_v23 }
  0x58   :  { %2298 = vmatprep.subr.bf16.mxu1 %v2811_v34 }
  0x5b   :  { %2300 = vmatpush3.bf16.msra.mxu1 %v3000_v28 }
  0x5c   :  { %2333 = vmatprep.subr.bf16.mxu1 %v2811_v34 }
  0xf1   :  { %v1899_v36 = vpop.f32.mrb[0].mxu1 }
  0xf2   :  { %v3041_v38 = vadd.f32 %v1899_v36, %v63_v33  ;;  %v281_v40 = vpop.f32.mrb[1].mxu1 }
  0xf3   :  { %v282_v30 = vadd.f32 %v281_v40, %v63_v33 }
  0xf5   :  { %v1902_v41 = vpop.f32.mrb[2].mxu1 }
  0xf6   :  { %v3043_v42 = vadd.f32 %v1902_v41, %v63_v33  ;;  %v291_v43 = vpop.f32.mrb[3].mxu1 }
  0xf7   :  { %v3045_v44 = vadd.f32 %v291_v43, %v63_v33 }
  0xf9   :  { %v1905_v46 = vpop.f32.mrb[4].mxu1 }
  0xfa   :  { %v3047_v47 = vadd.f32 %v1905_v46, %v63_v33  ;;  %v301_v48 = vpop.f32.mrb[5].mxu1 }
  0xfb   :  { %v3049_v51 = vadd.f32 %v301_v48, %v63_v33 }
  0xfd   :  { %v1908_v52 = vpop.f32.mrb[6].mxu1 }
  0xfe   :  { %v3051_v53 = vadd.f32 %v1908_v52, %v63_v33  ;;  %v311_v54 = vpop.f32.mrb[7].mxu1 }
  0xff   :  { %v3053_v56 = vadd.f32 %v311_v54, %v63_v33 }
 0x10b   :  { %v442_v62 = vpop.f32.mrb[0].mxu0 }
 0x10c   :  { %v2637_v1 = vadd.f32 %v442_v62, %v3055_v60  ;;  %v444_v2 = vpop.f32.mrb[1].mxu0 }
 0x10d   :  { %v2638_v5 = vadd.f32 %v444_v2, %v3057_v63 }
 0x10e   :  { %v1734_v4 = vmul.f32 -1.442695, %v2637_v1 }
 0x10f   :  { %v1735_v7 = vmul.f32 -1.442695, %v2638_v5 }
 0x110   :  { %2679 = vpow2.f32 %v1734_v4 }
 0x111   :  { %v513_v11 = vpop.f32.mrb[8].mxu1  ;;  %2681 = vpow2.f32 %v1735_v7 }
 0x112   :  { %v1943_v13 = vpop.f32.mrb[9].mxu1  ;;  %v531_v26 = vadd.f32 %v3064_v22, %v513_v11 }
 0x11a   :  { %v2680_v15 = vpop.eup %2679 }
 0x11b   :  { %v521_v16 = vadd.f32 1.0, %v2680_v15  ;;  %v2682_v21 = vpop.eup %2681 }
 0x11c   :  { %v528_v24 = vadd.f32 1.0, %v2682_v21 }
 0x11d   :  { %2683 = vrcp.f32 %v521_v16 }
 0x11e   :  { %2685 = vrcp.f32 %v528_v24 }
 0x127   :  { %v2684_v29 = vpop.eup %2683 }
 0x128   :  { %v532_v31 = vmul.f32 %v2684_v29, %v531_v26  ;;  %v2686_v36 = vpop.eup %2685 }
 0x129   :  { %v535_v41 = vsub.f32 1.0, %v2686_v36  ;;  %v537_v48 = vmul.f32 0.0, %v2686_v36 }
 0x12a   :  { %v533_v32 = vadd.f32 %v532_v31, %v282_v30 }
 0x12c   :  { %2687 = vtanh.f32 %v533_v32 }
 0x136   :  { %v2688_v43 = vpop.eup %2687 }
 0x137   :  { %v536_v46 = vmul.f32 %v2688_v43, %v535_v41 }
 0x139   :  { %v3067_v52 = vadd.f32 %v537_v48, %v536_v46 }
 0x13b   :  { %540 = vst.msk [vmem:[#allocation6] sm:$0xff] %vm539_vm3, %v3067_v52  ;;  %606 = vmatmul.mubr.f32.vlgmr.msra.gmra.mrb[2].mxu0 %v3067_v52  ;;  %1977 = vmatmul.mubr.f32.vlgmr.msra.gmra.mrb[10].mxu1 %v3067_v52 }
 0x13c   :  { %2304 = vmatpush1.bf16.msra.mxu0 %v2868_v9  ;;  %2335 = vmatpush3.bf16.msra.mxu1 %v2904_v35 }
 0x13d   :  { %2306 = vmatprep.subr.bf16.mxu0 %v2871_v12  ;;  %2336 = vmatprep.subr.bf16.mxu1 %v2811_v34 }
 0x13e   :  { %770 = vmatprep.mubr.f32.mxu0 %v2810_v0  ;;  %2011 = vmatprep.mubr.msk.f32.mxu1 %vm2812_vm2, %v2810_v0 }
 0x140   :  { %2308 = vmatpush1.bf16.msra.mxu0 %v2881_v18  ;;  %2338 = vmatpush3.bf16.msra.mxu1 %v2918_v45 }
 0x141   :  { %2310 = vmatprep.subr.bf16.mxu0 %v2884_v19  ;;  %2339 = vmatprep.subr.bf16.mxu1 %v2811_v34 }
 0x144   :  { %2312 = vmatpush1.bf16.msra.mxu0 %v2892_v25  ;;  %2341 = vmatpush3.bf16.msra.mxu1 %v2935_v55 }
 0x145   :  { %2314 = vmatprep.subr.bf16.mxu0 %v2898_v27  ;;  %2342 = vmatprep.subr.bf16.mxu1 %v2811_v34 }
 0x148   :  { %2316 = vmatpush1.bf16.msra.mxu0 %v2911_v37  ;;  %2344 = vmatpush3.bf16.msra.mxu1 %v2955_v3 }
 0x149   :  { %2318 = vmatprep.subr.bf16.mxu0 %v2914_v39  ;;  %2345 = vmatprep.subr.bf16.mxu1 %v2811_v34 }
 0x14c   :  { %2320 = vmatpush1.bf16.msra.mxu0 %v2928_v49  ;;  %2347 = vmatpush3.bf16.msra.mxu1 %v2972_v14 }
 0x14d   :  { %2322 = vmatprep.subr.bf16.mxu0 %v2931_v50  ;;  %2348 = vmatprep.subr.bf16.mxu1 %v2811_v34 }
 0x150   :  { %2324 = vmatpush1.bf16.msra.mxu0 %v2945_v59  ;;  %2350 = vmatpush3.bf16.msra.mxu1 %v2984_v20 }
 0x151   :  { %2326 = vmatprep.subr.bf16.mxu0 %v2951_v61  ;;  %2351 = vmatprep.subr.bf16.mxu1 %v2811_v34 }
 0x154   :  { %2328 = vmatpush1.bf16.msra.mxu0 %v2962_v6  ;;  %2353 = vmatpush3.bf16.msra.mxu1 %v2992_v23 }
 0x155   :  { %2330 = vmatprep.subr.bf16.mxu0 %v2968_v10  ;;  %2354 = vmatprep.subr.bf16.mxu1 %v2811_v34 }
 0x158   :  { %2332 = vmatpush1.bf16.msra.mxu0 %v2980_v17  ;;  %2356 = vmatpush3.bf16.msra.mxu1 %v3000_v28 }
 0x159   :  { %2358 = vmatprep.subr.bf16.mxu0 %v2866_v8  ;;  %2389 = vmatprep.subr.bf16.mxu1 %v2811_v34 }
 0x20e   :  { %v607_v33 = vpop.f32.mrb[2].mxu0  ;;  %v678_v40 = vpop.f32.mrb[10].mxu1 }
 0x20f   :  { %v2639_v54 = vadd.f32 %v607_v33, %v3055_v60  ;;  %v609_v57 = vpop.f32.mrb[3].mxu0  ;;  %v1978_v58 = vpop.f32.mrb[11].mxu1  ;;  %v696_v13 = vadd.f32 %v3064_v22, %v678_v40 }
 0x210   :  { %v2640_v1 = vadd.f32 %v609_v57, %v3057_v63 }
 0x211   :  { %v1736_v62 = vmul.f32 -1.442695, %v2639_v54 }
 0x212   :  { %v1737_v2 = vmul.f32 -1.442695, %v2640_v1 }
 0x213   :  { %2689 = vpow2.f32 %v1736_v62 }
 0x214   :  { %2691 = vpow2.f32 %v1737_v2 }
 0x21d   :  { %v2690_v4 = vpop.eup %2689 }
 0x21e   :  { %v686_v5 = vadd.f32 1.0, %v2690_v4  ;;  %v2692_v7 = vpop.eup %2691 }
 0x21f   :  { %v693_v11 = vadd.f32 1.0, %v2692_v7 }
 0x220   :  { %2693 = vrcp.f32 %v686_v5 }
 0x221   :  { %2695 = vrcp.f32 %v693_v11 }
 0x22a   :  { %v2694_v15 = vpop.eup %2693 }
 0x22b   :  { %v697_v16 = vmul.f32 %v2694_v15, %v696_v13  ;;  %v2696_v24 = vpop.eup %2695 }
 0x22c   :  { %v700_v26 = vsub.f32 1.0, %v2696_v24  ;;  %v702_v31 = vmul.f32 %v2696_v24, %v3067_v52 }
 0x22d   :  { %v698_v21 = vadd.f32 %v697_v16, %v3041_v38 }
 0x22f   :  { %2697 = vtanh.f32 %v698_v21 }
 0x239   :  { %v2698_v29 = vpop.eup %2697 }
 0x23a   :  { %v701_v30 = vmul.f32 %v2698_v29, %v700_v26 }
 0x23c   :  { %v3113_v32 = vadd.f32 %v702_v31, %v701_v30 }
 0x23e   :  { %705 = vst.msk [vmem:[#allocation6 + $0x8] sm:$0xff] %vm539_vm3, %v3113_v32  ;;  %771 = vmatmul.mubr.f32.vlgmr.msra.gmra.mrb[4].mxu0 %v3113_v32  ;;  %2012 = vmatmul.mubr.f32.vlgmr.msra.gmra.mrb[12].mxu1 %v3113_v32 }
 0x23f   :  { %2360 = vmatpush1.bf16.msra.mxu0 %v2868_v9  ;;  %2391 = vmatpush3.bf16.msra.mxu1 %v2904_v35 }
 0x240   :  { %2362 = vmatprep.subr.bf16.mxu0 %v2871_v12  ;;  %2392 = vmatprep.subr.bf16.mxu1 %v2811_v34 }
 0x241   :  { %935 = vmatprep.mubr.f32.mxu0 %v2810_v0  ;;  %2046 = vmatprep.mubr.msk.f32.mxu1 %vm2812_vm2, %v2810_v0 }
 0x243   :  { %2364 = vmatpush1.bf16.msra.mxu0 %v2881_v18  ;;  %2394 = vmatpush3.bf16.msra.mxu1 %v2918_v45 }
 0x244   :  { %2366 = vmatprep.subr.bf16.mxu0 %v2884_v19  ;;  %2395 = vmatprep.subr.bf16.mxu1 %v2811_v34 }
 0x247   :  { %2368 = vmatpush1.bf16.msra.mxu0 %v2892_v25  ;;  %2397 = vmatpush3.bf16.msra.mxu1 %v2935_v55 }
 0x248   :  { %2370 = vmatprep.subr.bf16.mxu0 %v2898_v27  ;;  %2398 = vmatprep.subr.bf16.mxu1 %v2811_v34 }
 0x24b   :  { %2372 = vmatpush1.bf16.msra.mxu0 %v2911_v37  ;;  %2400 = vmatpush3.bf16.msra.mxu1 %v2955_v3 }
 0x24c   :  { %2374 = vmatprep.subr.bf16.mxu0 %v2914_v39  ;;  %2401 = vmatprep.subr.bf16.mxu1 %v2811_v34 }
 0x24f   :  { %2376 = vmatpush1.bf16.msra.mxu0 %v2928_v49  ;;  %2403 = vmatpush3.bf16.msra.mxu1 %v2972_v14 }
 0x250   :  { %2378 = vmatprep.subr.bf16.mxu0 %v2931_v50  ;;  %2404 = vmatprep.subr.bf16.mxu1 %v2811_v34 }
 0x253   :  { %2380 = vmatpush1.bf16.msra.mxu0 %v2945_v59  ;;  %2406 = vmatpush3.bf16.msra.mxu1 %v2984_v20 }
 0x254   :  { %2382 = vmatprep.subr.bf16.mxu0 %v2951_v61  ;;  %2407 = vmatprep.subr.bf16.mxu1 %v2811_v34 }
 0x257   :  { %2384 = vmatpush1.bf16.msra.mxu0 %v2962_v6  ;;  %2409 = vmatpush3.bf16.msra.mxu1 %v2992_v23 }
 0x258   :  { %2386 = vmatprep.subr.bf16.mxu0 %v2968_v10  ;;  %2410 = vmatprep.subr.bf16.mxu1 %v2811_v34 }
 0x25b   :  { %2388 = vmatpush1.bf16.msra.mxu0 %v2980_v17  ;;  %2412 = vmatpush3.bf16.msra.mxu1 %v3000_v28 }
 0x25c   :  { %2414 = vmatprep.subr.bf16.mxu0 %v2866_v8  ;;  %2445 = vmatprep.subr.bf16.mxu1 %v2811_v34 }
 0x311   :  { %v772_v38 = vpop.f32.mrb[4].mxu0  ;;  %v843_v36 = vpop.f32.mrb[12].mxu1 }
 0x312   :  { %v2641_v41 = vadd.f32 %v772_v38, %v3055_v60  ;;  %v774_v43 = vpop.f32.mrb[5].mxu0  ;;  %v2013_v46 = vpop.f32.mrb[13].mxu1  ;;  %v861_v62 = vadd.f32 %v3064_v22, %v843_v36 }
 0x313   :  { %v2642_v52 = vadd.f32 %v774_v43, %v3057_v63 }
 0x314   :  { %v1738_v48 = vmul.f32 -1.442695, %v2641_v41 }
 0x315   :  { %v1739_v33 = vmul.f32 -1.442695, %v2642_v52 }
 0x316   :  { %2699 = vpow2.f32 %v1738_v48 }
 0x317   :  { %2701 = vpow2.f32 %v1739_v33 }
 0x320   :  { %v2700_v40 = vpop.eup %2699 }
 0x321   :  { %v851_v54 = vadd.f32 1.0, %v2700_v40  ;;  %v2702_v57 = vpop.eup %2701 }
 0x322   :  { %v858_v58 = vadd.f32 1.0, %v2702_v57 }
 0x323   :  { %2703 = vrcp.f32 %v851_v54 }
 0x324   :  { %2705 = vrcp.f32 %v858_v58 }
 0x32d   :  { %v2704_v1 = vpop.eup %2703 }
 0x32e   :  { %v862_v2 = vmul.f32 %v2704_v1, %v861_v62  ;;  %v2706_v5 = vpop.eup %2705 }
 0x32f   :  { %v865_v7 = vsub.f32 1.0, %v2706_v5  ;;  %v867_v15 = vmul.f32 %v2706_v5, %v3113_v32 }
 0x330   :  { %v863_v4 = vadd.f32 %v862_v2, %v3045_v44 }
 0x332   :  { %2707 = vtanh.f32 %v863_v4 }
 0x33c   :  { %v2708_v11 = vpop.eup %2707 }
 0x33d   :  { %v866_v13 = vmul.f32 %v2708_v11, %v865_v7 }
 0x33f   :  { %v3159_v16 = vadd.f32 %v867_v15, %v866_v13 }
 0x341   :  { %870 = vst.msk [vmem:[#allocation6 + $0x10] sm:$0xff] %vm539_vm3, %v3159_v16  ;;  %936 = vmatmul.mubr.f32.vlgmr.msra.gmra.mrb[6].mxu0 %v3159_v16  ;;  %2047 = vmatmul.mubr.f32.vlgmr.msra.gmra.mrb[14].mxu1 %v3159_v16 }
 0x342   :  { %2416 = vmatpush1.bf16.msra.mxu0 %v2868_v9  ;;  %2447 = vmatpush3.bf16.msra.mxu1 %v2904_v35 }
 0x343   :  { %2418 = vmatprep.subr.bf16.mxu0 %v2871_v12  ;;  %2448 = vmatprep.subr.bf16.mxu1 %v2811_v34 }
 0x344   :  { %1100 = vmatprep.mubr.f32.mxu0 %v2810_v0  ;;  %2081 = vmatprep.mubr.msk.f32.mxu1 %vm2812_vm2, %v2810_v0 }
 0x346   :  { %2420 = vmatpush1.bf16.msra.mxu0 %v2881_v18  ;;  %2450 = vmatpush3.bf16.msra.mxu1 %v2918_v45 }
 0x347   :  { %2422 = vmatprep.subr.bf16.mxu0 %v2884_v19  ;;  %2451 = vmatprep.subr.bf16.mxu1 %v2811_v34 }
 0x34a   :  { %2424 = vmatpush1.bf16.msra.mxu0 %v2892_v25  ;;  %2453 = vmatpush3.bf16.msra.mxu1 %v2935_v55 }
 0x34b   :  { %2426 = vmatprep.subr.bf16.mxu0 %v2898_v27  ;;  %2454 = vmatprep.subr.bf16.mxu1 %v2811_v34 }
 0x34e   :  { %2428 = vmatpush1.bf16.msra.mxu0 %v2911_v37  ;;  %2456 = vmatpush3.bf16.msra.mxu1 %v2955_v3 }
 0x34f   :  { %2430 = vmatprep.subr.bf16.mxu0 %v2914_v39  ;;  %2457 = vmatprep.subr.bf16.mxu1 %v2811_v34 }
 0x352   :  { %2432 = vmatpush1.bf16.msra.mxu0 %v2928_v49  ;;  %2459 = vmatpush3.bf16.msra.mxu1 %v2972_v14 }
 0x353   :  { %2434 = vmatprep.subr.bf16.mxu0 %v2931_v50  ;;  %2460 = vmatprep.subr.bf16.mxu1 %v2811_v34 }
 0x356   :  { %2436 = vmatpush1.bf16.msra.mxu0 %v2945_v59  ;;  %2462 = vmatpush3.bf16.msra.mxu1 %v2984_v20 }
 0x357   :  { %2438 = vmatprep.subr.bf16.mxu0 %v2951_v61  ;;  %2463 = vmatprep.subr.bf16.mxu1 %v2811_v34 }
 0x35a   :  { %2440 = vmatpush1.bf16.msra.mxu0 %v2962_v6  ;;  %2465 = vmatpush3.bf16.msra.mxu1 %v2992_v23 }
 0x35b   :  { %2442 = vmatprep.subr.bf16.mxu0 %v2968_v10  ;;  %2466 = vmatprep.subr.bf16.mxu1 %v2811_v34 }
 0x35e   :  { %2444 = vmatpush1.bf16.msra.mxu0 %v2980_v17  ;;  %2468 = vmatpush3.bf16.msra.mxu1 %v3000_v28 }
 0x35f   :  { %2470 = vmatprep.subr.bf16.mxu0 %v2866_v8  ;;  %2501 = vmatprep.subr.bf16.mxu1 %v2811_v34 }
 0x414   :  { %v937_v44 = vpop.f32.mrb[6].mxu0  ;;  %v1008_v21 = vpop.f32.mrb[14].mxu1 }
 0x415   :  { %v2643_v24 = vadd.f32 %v937_v44, %v3055_v60  ;;  %v939_v26 = vpop.f32.mrb[7].mxu0  ;;  %v2048_v29 = vpop.f32.mrb[15].mxu1  ;;  %v1026_v46 = vadd.f32 %v3064_v22, %v1008_v21 }
 0x416   :  { %v2644_v31 = vadd.f32 %v939_v26, %v3057_v63 }
 0x417   :  { %v1740_v30 = vmul.f32 -1.442695, %v2643_v24 }
 0x418   :  { %v1741_v32 = vmul.f32 -1.442695, %v2644_v31 }
 0x419   :  { %2709 = vpow2.f32 %v1740_v30 }
 0x41a   :  { %2711 = vpow2.f32 %v1741_v32 }
 0x423   :  { %v2710_v38 = vpop.eup %2709 }
 0x424   :  { %v1016_v36 = vadd.f32 1.0, %v2710_v38  ;;  %v2712_v41 = vpop.eup %2711 }
 0x425   :  { %v1023_v43 = vadd.f32 1.0, %v2712_v41 }
 0x426   :  { %2713 = vrcp.f32 %v1016_v36 }
 0x427   :  { %2715 = vrcp.f32 %v1023_v43 }
 0x430   :  { %v2714_v48 = vpop.eup %2713 }
 0x431   :  { %v1027_v52 = vmul.f32 %v2714_v48, %v1026_v46  ;;  %v2716_v40 = vpop.eup %2715 }
 0x432   :  { %v1030_v54 = vsub.f32 1.0, %v2716_v40  ;;  %v1032_v62 = vmul.f32 %v2716_v40, %v3159_v16 }
 0x433   :  { %v1028_v33 = vadd.f32 %v1027_v52, %v3043_v42 }
 0x435   :  { %2717 = vtanh.f32 %v1028_v33 }
 0x43f   :  { %v2718_v57 = vpop.eup %2717 }
 0x440   :  { %v1031_v58 = vmul.f32 %v2718_v57, %v1030_v54 }
 0x442   :  { %v3205_v1 = vadd.f32 %v1032_v62, %v1031_v58 }
 0x444   :  { %1035 = vst.msk [vmem:[#allocation6 + $0x18] sm:$0xff] %vm539_vm3, %v3205_v1  ;;  %1101 = vmatmul.mubr.f32.vlgmr.msra.gmra.mrb[8].mxu0 %v3205_v1  ;;  %2082 = vmatmul.mubr.f32.vlgmr.msra.gmra.mrb[16].mxu1 %v3205_v1 }
 0x445   :  { %2472 = vmatpush1.bf16.msra.mxu0 %v2868_v9  ;;  %2503 = vmatpush3.bf16.msra.mxu1 %v2904_v35 }
 0x446   :  { %2474 = vmatprep.subr.bf16.mxu0 %v2871_v12  ;;  %2504 = vmatprep.subr.bf16.mxu1 %v2811_v34 }
 0x447   :  { %1265 = vmatprep.mubr.f32.mxu0 %v2810_v0  ;;  %2116 = vmatprep.mubr.msk.f32.mxu1 %vm2812_vm2, %v2810_v0 }
 0x449   :  { %2476 = vmatpush1.bf16.msra.mxu0 %v2881_v18  ;;  %2506 = vmatpush3.bf16.msra.mxu1 %v2918_v45 }
 0x44a   :  { %2478 = vmatprep.subr.bf16.mxu0 %v2884_v19  ;;  %2507 = vmatprep.subr.bf16.mxu1 %v2811_v34 }
 0x44d   :  { %2480 = vmatpush1.bf16.msra.mxu0 %v2892_v25  ;;  %2509 = vmatpush3.bf16.msra.mxu1 %v2935_v55 }
 0x44e   :  { %2482 = vmatprep.subr.bf16.mxu0 %v2898_v27  ;;  %2510 = vmatprep.subr.bf16.mxu1 %v2811_v34 }
 0x451   :  { %2484 = vmatpush1.bf16.msra.mxu0 %v2911_v37  ;;  %2512 = vmatpush3.bf16.msra.mxu1 %v2955_v3 }
 0x452   :  { %2486 = vmatprep.subr.bf16.mxu0 %v2914_v39  ;;  %2513 = vmatprep.subr.bf16.mxu1 %v2811_v34 }
 0x455   :  { %2488 = vmatpush1.bf16.msra.mxu0 %v2928_v49  ;;  %2515 = vmatpush3.bf16.msra.mxu1 %v2972_v14 }
 0x456   :  { %2490 = vmatprep.subr.bf16.mxu0 %v2931_v50  ;;  %2516 = vmatprep.subr.bf16.mxu1 %v2811_v34 }
 0x459   :  { %2492 = vmatpush1.bf16.msra.mxu0 %v2945_v59  ;;  %2518 = vmatpush3.bf16.msra.mxu1 %v2984_v20 }
 0x45a   :  { %2494 = vmatprep.subr.bf16.mxu0 %v2951_v61  ;;  %2519 = vmatprep.subr.bf16.mxu1 %v2811_v34 }
 0x45d   :  { %2496 = vmatpush1.bf16.msra.mxu0 %v2962_v6  ;;  %2521 = vmatpush3.bf16.msra.mxu1 %v2992_v23 }
 0x45e   :  { %2498 = vmatprep.subr.bf16.mxu0 %v2968_v10  ;;  %2522 = vmatprep.subr.bf16.mxu1 %v2811_v34 }
 0x461   :  { %2500 = vmatpush1.bf16.msra.mxu0 %v2980_v17  ;;  %2524 = vmatpush3.bf16.msra.mxu1 %v3000_v28 }
 0x462   :  { %2526 = vmatprep.subr.bf16.mxu0 %v2866_v8  ;;  %2557 = vmatprep.subr.bf16.mxu1 %v2811_v34 }
 0x517   :  { %v1102_v42 = vpop.f32.mrb[8].mxu0  ;;  %v1173_v2 = vpop.f32.mrb[16].mxu1 }
 0x518   :  { %v2645_v4 = vadd.f32 %v1102_v42, %v3055_v60  ;;  %v1104_v5 = vpop.f32.mrb[9].mxu0  ;;  %v2083_v7 = vpop.f32.mrb[17].mxu1  ;;  %v1191_v26 = vadd.f32 %v3064_v22, %v1173_v2 }
 0x519   :  { %v2646_v13 = vadd.f32 %v1104_v5, %v3057_v63 }
 0x51a   :  { %v1742_v11 = vmul.f32 -1.442695, %v2645_v4 }
 0x51b   :  { %v1743_v15 = vmul.f32 -1.442695, %v2646_v13 }
 0x51c   :  { %2719 = vpow2.f32 %v1742_v11 }
 0x51d   :  { %2721 = vpow2.f32 %v1743_v15 }
 0x526   :  { %v2720_v16 = vpop.eup %2719 }
 0x527   :  { %v1181_v44 = vadd.f32 1.0, %v2720_v16  ;;  %v2722_v21 = vpop.eup %2721 }
 0x528   :  { %v1188_v24 = vadd.f32 1.0, %v2722_v21 }
 0x529   :  { %2723 = vrcp.f32 %v1181_v44 }
 0x52a   :  { %2725 = vrcp.f32 %v1188_v24 }
 0x533   :  { %v2724_v29 = vpop.eup %2723 }
 0x534   :  { %v1192_v30 = vmul.f32 %v2724_v29, %v1191_v26  ;;  %v2726_v32 = vpop.eup %2725 }
 0x535   :  { %v1195_v38 = vsub.f32 1.0, %v2726_v32  ;;  %v1197_v43 = vmul.f32 %v2726_v32, %v3205_v1 }
 0x536   :  { %v1193_v31 = vadd.f32 %v1192_v30, %v3049_v51 }
 0x538   :  { %2727 = vtanh.f32 %v1193_v31 }
 0x542   :  { %v2728_v36 = vpop.eup %2727 }
 0x543   :  { %v1196_v41 = vmul.f32 %v2728_v36, %v1195_v38 }
 0x545   :  { %v3251_v46 = vadd.f32 %v1197_v43, %v1196_v41 }
 0x547   :  { %1200 = vst.msk [vmem:[#allocation6 + $0x20] sm:$0xff] %vm539_vm3, %v3251_v46  ;;  %1266 = vmatmul.mubr.f32.vlgmr.msra.gmra.mrb[10].mxu0 %v3251_v46  ;;  %2117 = vmatmul.mubr.f32.vlgmr.msra.gmra.mrb[18].mxu1 %v3251_v46 }
 0x548   :  { %2528 = vmatpush1.bf16.msra.mxu0 %v2868_v9  ;;  %2559 = vmatpush3.bf16.msra.mxu1 %v2904_v35 }
 0x549   :  { %2530 = vmatprep.subr.bf16.mxu0 %v2871_v12  ;;  %2560 = vmatprep.subr.bf16.mxu1 %v2811_v34 }
 0x54a   :  { %1430 = vmatprep.mubr.f32.mxu0 %v2810_v0  ;;  %2151 = vmatprep.mubr.msk.f32.mxu1 %vm2812_vm2, %v2810_v0 }
 0x54c   :  { %2532 = vmatpush1.bf16.msra.mxu0 %v2881_v18  ;;  %2562 = vmatpush3.bf16.msra.mxu1 %v2918_v45 }
 0x54d   :  { %2534 = vmatprep.subr.bf16.mxu0 %v2884_v19  ;;  %2563 = vmatprep.subr.bf16.mxu1 %v2811_v34 }
 0x550   :  { %2536 = vmatpush1.bf16.msra.mxu0 %v2892_v25  ;;  %2565 = vmatpush3.bf16.msra.mxu1 %v2935_v55 }
 0x551   :  { %2538 = vmatprep.subr.bf16.mxu0 %v2898_v27  ;;  %2566 = vmatprep.subr.bf16.mxu1 %v2811_v34 }
 0x554   :  { %2540 = vmatpush1.bf16.msra.mxu0 %v2911_v37  ;;  %2568 = vmatpush3.bf16.msra.mxu1 %v2955_v3 }
 0x555   :  { %2542 = vmatprep.subr.bf16.mxu0 %v2914_v39  ;;  %2569 = vmatprep.subr.bf16.mxu1 %v2811_v34 }
 0x558   :  { %2544 = vmatpush1.bf16.msra.mxu0 %v2928_v49  ;;  %2571 = vmatpush3.bf16.msra.mxu1 %v2972_v14 }
 0x559   :  { %2546 = vmatprep.subr.bf16.mxu0 %v2931_v50  ;;  %2572 = vmatprep.subr.bf16.mxu1 %v2811_v34 }
 0x55c   :  { %2548 = vmatpush1.bf16.msra.mxu0 %v2945_v59  ;;  %2574 = vmatpush3.bf16.msra.mxu1 %v2984_v20 }
 0x55d   :  { %2550 = vmatprep.subr.bf16.mxu0 %v2951_v61  ;;  %2575 = vmatprep.subr.bf16.mxu1 %v2811_v34 }
 0x560   :  { %2552 = vmatpush1.bf16.msra.mxu0 %v2962_v6  ;;  %2577 = vmatpush3.bf16.msra.mxu1 %v2992_v23 }
 0x561   :  { %2554 = vmatprep.subr.bf16.mxu0 %v2968_v10  ;;  %2578 = vmatprep.subr.bf16.mxu1 %v2811_v34 }
 0x564   :  { %2556 = vmatpush1.bf16.msra.mxu0 %v2980_v17  ;;  %2580 = vmatpush3.bf16.msra.mxu1 %v3000_v28 }
 0x565   :  { %2582 = vmatprep.subr.bf16.mxu0 %v2866_v8  ;;  %2613 = vmatprep.subr.bf16.mxu1 %v2811_v34 }
 0x61a   :  { %v1267_v51 = vpop.f32.mrb[10].mxu0  ;;  %v1338_v48 = vpop.f32.mrb[18].mxu1 }
 0x61b   :  { %v2647_v52 = vadd.f32 %v1267_v51, %v3055_v60  ;;  %v1269_v33 = vpop.f32.mrb[11].mxu0  ;;  %v2118_v40 = vpop.f32.mrb[19].mxu1  ;;  %v1356_v8 = vadd.f32 %v3064_v22, %v1338_v48 }
 0x61c   :  { %v2648_v57 = vadd.f32 %v1269_v33, %v3057_v63 }
 0x61d   :  { %v1744_v54 = vmul.f32 -1.442695, %v2647_v52 }
 0x61e   :  { %v1745_v58 = vmul.f32 -1.442695, %v2648_v57 }
 0x61f   :  { %2729 = vpow2.f32 %v1744_v54 }
 0x620   :  { %2731 = vpow2.f32 %v1745_v58 }
 0x629   :  { %v2730_v62 = vpop.eup %2729 }
 0x62a   :  { %v1346_v1 = vadd.f32 1.0, %v2730_v62  ;;  %v2732_v42 = vpop.eup %2731 }
 0x62b   :  { %v1353_v2 = vadd.f32 1.0, %v2732_v42 }
 0x62c   :  { %2733 = vrcp.f32 %v1346_v1 }
 0x62d   :  { %2735 = vrcp.f32 %v1353_v2 }
 0x636   :  { %v2734_v4 = vpop.eup %2733 }
 0x637   :  { %v1357_v5 = vmul.f32 %v2734_v4, %v1356_v8  ;;  %v2736_v11 = vpop.eup %2735 }
 0x638   :  { %v1360_v13 = vsub.f32 1.0, %v2736_v11  ;;  %v1362_v44 = vmul.f32 %v2736_v11, %v3251_v46 }
 0x639   :  { %v1358_v7 = vadd.f32 %v1357_v5, %v3047_v47 }
 0x63b   :  { %2737 = vtanh.f32 %v1358_v7 }
 0x645   :  { %v2738_v15 = vpop.eup %2737 }
 0x646   :  { %v1361_v16 = vmul.f32 %v2738_v15, %v1360_v13 }
 0x648   :  { %v1363_v21 = vadd.f32 %v1362_v44, %v1361_v16 }
 0x64a   :  { %1365 = vst.msk [vmem:[#allocation6 + $0x28] sm:$0xff] %vm539_vm3, %v1363_v21  ;;  %1431 = vmatmul.mubr.f32.vlgmr.msra.gmra.mrb[12].mxu0 %v1363_v21  ;;  %2152 = vmatmul.mubr.f32.vlgmr.msra.gmra.mrb[20].mxu1 %v1363_v21 }
 0x64b   :  { %2584 = vmatpush1.bf16.msra.mxu0 %v2868_v9  ;;  %2615 = vmatpush3.bf16.msra.mxu1 %v2904_v35 }
 0x64c   :  { %2586 = vmatprep.subr.bf16.mxu0 %v2871_v12  ;;  %2616 = vmatprep.subr.bf16.mxu1 %v2811_v34 }
 0x64d   :  { %1595 = vmatprep.mubr.f32.mxu0 %v2810_v0  ;;  %2186 = vmatprep.mubr.msk.f32.mxu1 %vm2812_vm2, %v2810_v0 }
 0x64f   :  { %2588 = vmatpush1.bf16.msra.mxu0 %v2881_v18  ;;  %2618 = vmatpush3.bf16.msra.mxu1 %v2918_v45 }
 0x650   :  { %2590 = vmatprep.subr.bf16.mxu0 %v2884_v19  ;;  %2619 = vmatprep.subr.bf16.mxu1 %v2811_v34 }
 0x653   :  { %2592 = vmatpush1.bf16.msra.mxu0 %v2892_v25  ;;  %2621 = vmatpush3.bf16.msra.mxu1 %v2935_v55 }
 0x654   :  { %2594 = vmatprep.subr.bf16.mxu0 %v2898_v27  ;;  %2622 = vmatprep.subr.bf16.mxu1 %v2811_v34 }
 0x657   :  { %2596 = vmatpush1.bf16.msra.mxu0 %v2911_v37  ;;  %2624 = vmatpush3.bf16.msra.mxu1 %v2955_v3 }
 0x658   :  { %2598 = vmatprep.subr.bf16.mxu0 %v2914_v39  ;;  %2625 = vmatprep.subr.bf16.mxu1 %v2811_v34 }
 0x65b   :  { %2600 = vmatpush1.bf16.msra.mxu0 %v2928_v49  ;;  %2627 = vmatpush3.bf16.msra.mxu1 %v2972_v14 }
 0x65c   :  { %2602 = vmatprep.subr.bf16.mxu0 %v2931_v50  ;;  %2628 = vmatprep.subr.bf16.mxu1 %v2811_v34 }
 0x65f   :  { %2604 = vmatpush1.bf16.msra.mxu0 %v2945_v59  ;;  %2630 = vmatpush3.bf16.msra.mxu1 %v2984_v20 }
 0x660   :  { %2606 = vmatprep.subr.bf16.mxu0 %v2951_v61  ;;  %2631 = vmatprep.subr.bf16.mxu1 %v2811_v34 }
 0x663   :  { %2608 = vmatpush1.bf16.msra.mxu0 %v2962_v6  ;;  %2633 = vmatpush3.bf16.msra.mxu1 %v2992_v23 }
 0x664   :  { %2610 = vmatprep.subr.bf16.mxu0 %v2968_v10  ;;  %2634 = vmatprep.subr.bf16.mxu1 %v2811_v34 }
 0x667   :  { %2612 = vmatpush1.bf16.msra.mxu0 %v2980_v17  ;;  %2636 = vmatpush3.bf16.msra.mxu1 %v3000_v28 }
 0x71d   :  { %v1432_v0 = vpop.f32.mrb[12].mxu0  ;;  %v1503_v9 = vpop.f32.mrb[20].mxu1 }
 0x71e   :  { %v2649_v12 = vadd.f32 %v1432_v0, %v3055_v60  ;;  %v1434_v18 = vpop.f32.mrb[13].mxu0  ;;  %v2153_v19 = vpop.f32.mrb[21].mxu1  ;;  %v1521_v49 = vadd.f32 %v3064_v22, %v1503_v9 }
 0x71f   :  { %v2650_v27 = vadd.f32 %v1434_v18, %v3057_v63 }
 0x720   :  { %v1746_v25 = vmul.f32 -1.442695, %v2649_v12 }
 0x721   :  { %v1747_v35 = vmul.f32 -1.442695, %v2650_v27 }
 0x722   :  { %2739 = vpow2.f32 %v1746_v25 }
 0x723   :  { %2741 = vpow2.f32 %v1747_v35 }
 0x72c   :  { %v2740_v37 = vpop.eup %2739 }
 0x72d   :  { %v1511_v39 = vadd.f32 1.0, %v2740_v37  ;;  %v2742_v34 = vpop.eup %2741 }
 0x72e   :  { %v1518_v45 = vadd.f32 1.0, %v2742_v34 }
 0x72f   :  { %2743 = vrcp.f32 %v1511_v39 }
 0x730   :  { %2745 = vrcp.f32 %v1518_v45 }
 0x739   :  { %v2744_v50 = vpop.eup %2743 }
 0x73a   :  { %v1522_v55 = vmul.f32 %v2744_v50, %v1521_v49  ;;  %v2746_v61 = vpop.eup %2745 }
 0x73b   :  { %v1525_v3 = vsub.f32 1.0, %v2746_v61  ;;  %v1527_v14 = vmul.f32 %v2746_v61, %v1363_v21 }
 0x73c   :  { %v1523_v59 = vadd.f32 %v1522_v55, %v3053_v56 }
 0x73e   :  { %2747 = vtanh.f32 %v1523_v59 }
 0x748   :  { %v2748_v6 = vpop.eup %2747 }
 0x749   :  { %v1526_v10 = vmul.f32 %v2748_v6, %v1525_v3 }
 0x74b   :  { %v1528_v17 = vadd.f32 %v1527_v14, %v1526_v10 }
 0x74d   :  { %1530 = vst.msk [vmem:[#allocation6 + $0x30] sm:$0xff] %vm539_vm3, %v1528_v17  ;;  %1596 = vmatmul.mubr.f32.vlgmr.msra.gmra.mrb[14].mxu0 %v1528_v17  ;;  %2187 = vmatmul.mubr.f32.vlgmr.msra.gmra.mrb[22].mxu1 %v1528_v17 }
 0x820   :  { %v1597_v20 = vpop.f32.mrb[14].mxu0  ;;  %v1668_v23 = vpop.f32.mrb[22].mxu1 }
 0x821   :  { %v2651_v28 = vadd.f32 %v1597_v20, %v3055_v60  ;;  %v1599_v47 = vpop.f32.mrb[15].mxu0  ;;  %v2188_v24 = vpop.f32.mrb[23].mxu1  ;;  %v1686_v36 = vadd.f32 %v3064_v22, %v1668_v23 }
 0x822   :  { %v2652_v56 = vadd.f32 %v1599_v47, %v3057_v63 }
 0x823   :  { %v1748_v26 = vmul.f32 -1.442695, %v2651_v28 }
 0x824   :  { %v1749_v29 = vmul.f32 -1.442695, %v2652_v56 }
 0x825   :  { %2749 = vpow2.f32 %v1748_v26 }
 0x826   :  { %2751 = vpow2.f32 %v1749_v29 }
 0x82f   :  { %v2750_v30 = vpop.eup %2749 }
 0x830   :  { %v1676_v31 = vadd.f32 1.0, %v2750_v30  ;;  %v2752_v32 = vpop.eup %2751 }
 0x831   :  { %v1683_v38 = vadd.f32 1.0, %v2752_v32 }
 0x832   :  { %2753 = vrcp.f32 %v1676_v31 }
 0x833   :  { %2755 = vrcp.f32 %v1683_v38 }
 0x83c   :  { %v2754_v41 = vpop.eup %2753 }
 0x83d   :  { %v1687_v43 = vmul.f32 %v2754_v41, %v1686_v36  ;;  %v2756_v46 = vpop.eup %2755 }
 0x83e   :  { %v1690_v51 = vsub.f32 1.0, %v2756_v46  ;;  %v1692_v52 = vmul.f32 %v2756_v46, %v1528_v17 }
 0x83f   :  { %v1688_v60 = vadd.f32 %v1687_v43, %v3051_v53 }
 0x841   :  { %2757 = vtanh.f32 %v1688_v60 }
 0x84b   :  { %v2758_v63 = vpop.eup %2757 }
 0x84c   :  { %v1691_v48 = vmul.f32 %v2758_v63, %v1690_v51 }
 0x84e   :  { %v1693_v33 = vadd.f32 %v1692_v52, %v1691_v48 }
 0x850   :  { %1695 = vst.msk [vmem:[#allocation6 + $0x38] sm:$0xff] %vm539_vm3, %v1693_v33 }
 0x851   :  { %2792 = shalt.err (!%p2789_p12)
}
 0x852   :  { %s2793_s6 = scalar_lea.hbm %s3358_s5, 1024 }
 0x853   :  { %p2794_p13 = scmp.ne.s32.totalorder %s3358_s5, %s2793_s6  ;;  %p2797_p0 = scmp.lt.u32.totalorder %s2793_s6, %s3358_s5 }
 0x855   :  { %p2799_p1 = pnand %p2797_p0, %p2794_p13 }
 0x857   :  { %2802 = shalt.err (!%p2799_p1)
}
 0x858   :  { %s2814_s2 = smov 128   ;;  %s2815_s11 = smov 8  }
 0x859   :  { %1708 = dma.vmem_to_hbm [thread:$0]  %s1703_s27, 1024, %s3358_s5, [#allocation5], %s2814_s2, %s2814_s2, %s2815_s11  }
 0x85a   :  { %2805 = dma.done.wait [#allocation5], 1024  }
 0x85b   :  { %2806 = vsyncadd [#allocation5], 4294966272 }
 0x85c   :  { %1712 = vsyncpa [#allocation4], 1 }
 0x85d   :  { %1713 = vsyncpa [#allocation5], 1 }

</bundles_post_ra>
